<compile_context>
chip_gen: v7x
topology: tpu7x:2x2x1
jax: 0.10.0
libtpu: 0.0.40
codegen_flags: <defaults>
</compile_context>

<pallas_src>
import functools

import jax
import jax.numpy as jnp
from jax.experimental import pallas as pl
from jax.experimental.pallas import tpu as pltpu

CONFIG = (4, 8, 5, 1)   # param_count == 91
LANE = 128              # batch lives on the 128-lane axis
SUB = 16                # sublane rows per register-resident sub-slab


def _layer_offsets(config):
    """Static (w_off, b_off, n_in, n_out) offsets into the flat parameter vector."""
    offs, off = [], 0
    for li in range(len(config) - 1):
        n_in, n_out = config[li], config[li + 1]
        offs.append((off, off + n_in * n_out, n_in, n_out))
        off += n_in * n_out + n_out
    return tuple(offs), off


_LAYERS, PARAM_COUNT = _layer_offsets(CONFIG)   # PARAM_COUNT == 91


def nfq_kernel(p_ref, x_ref, o_ref):
    """p_ref: SMEM f32[91]  flat [w1|b1|w2|b2|w3|b3], weights stored [in, out] row-major
       x_ref: VMEM f32[4, BS, 128]  feature-major, batch index = (row, lane)
       o_ref: VMEM f32[BS, 128]     lane/sublane-dense output slab"""
    # Hoist all 91 scalar reads above the batch loop (they are loop-invariant).
    layers = []
    for (w_off, b_off, n_in, n_out) in _LAYERS:
        w = [[p_ref[w_off + i * n_out + j] for j in range(n_out)] for i in range(n_in)]
        b = [p_ref[b_off + j] for j in range(n_out)]
        layers.append((w, b, n_in, n_out))

    n_sub = x_ref.shape[1] // SUB   # BS is always a multiple of SUB

    @pl.loop(0, n_sub)
    def _(s):
        r0 = pl.multiple_of(s * SUB, SUB)
        # Dense [SUB, 128] activation slabs: every sublane & lane of each vreg used.
        h = [x_ref[i, pl.ds(r0, SUB), :] for i in range(CONFIG[0])]
        for (w, b, n_in, n_out) in layers:
            nxt = []
            for j in range(n_out):
                # bias + unrolled scalar-broadcast multiply/add chain (pure VPU work)
                acc = h[0] * w[0][j] + b[j]
                for i in range(1, n_in):
                    acc = acc + h[i] * w[i][j]
                # exact sigmoid, single EUP op: sigmoid(z) = 0.5*tanh(0.5*z) + 0.5
                nxt.append(0.5 * jnp.tanh(0.5 * acc) + 0.5)
            h = nxt
        o_ref[pl.ds(r0, SUB), :] = h[0].astype(o_ref.dtype)


def _cdiv(a, b):
    return -(-a // b)


def _round_up(n, m):
    return _cdiv(n, m) * m


def _choose_tiling(batch, max_block_rows):
    """Pick (rows_per_block, num_steps); rows_per_block is a multiple of SUB."""
    max_block_rows = max(SUB, _round_up(max_block_rows, SUB))
    rows = _round_up(_cdiv(batch, LANE), SUB)      # 128-lane rows of batch needed
    steps = _cdiv(rows, max_block_rows)
    if steps == 1 and rows >= 2 * SUB:
        steps = 2                                  # keep both v7x TensorCores busy
    bs = _round_up(_cdiv(rows, steps), SUB)
    return bs, steps


def flatten_params(params):
    """Flatten params into the single f32[91] vector consumed by the kernel."""
    parts = []
    for li in range(len(CONFIG) - 1):
        parts.append(params[f"w{li + 1}"].reshape(-1))   # [in, out], row-major
        parts.append(params[f"b{li + 1}"].reshape(-1))   # [out]
    return jnp.concatenate(parts).astype(jnp.float32)


@functools.partial(jax.jit, static_argnames=("max_block_rows",))
def nfq_forward(x, params, *, max_block_rows=1024):
    """x: [B, 4] float32 -> [B, 1] float32 (matches NFQNetwork.forward)."""
    B = x.shape[0]
    bs, steps = _choose_tiling(B, max_block_rows)
    nb_pad = bs * steps
    b_pad = nb_pad * LANE

    # Layout plumbing: one transpose+pad pass -> feature-major, lane/sublane-dense
    # [4, nb_pad, 128] slab.  Kernel is VALU-bound so this pass is not dominant;
    # feature-major callers can skip it by calling pallas_call directly.
    x_t = (jnp.zeros((CONFIG[0], b_pad), jnp.float32)
           .at[:, :B].set(x.T.astype(jnp.float32))
           .reshape(CONFIG[0], nb_pad, LANE))
    p_flat = flatten_params(params)

    out = pl.pallas_call(
        nfq_kernel,
        out_shape=jax.ShapeDtypeStruct((nb_pad, LANE), jnp.float32),
        grid_spec=pltpu.PrefetchScalarGridSpec(
            num_scalar_prefetch=0,
            grid=(steps,),
            in_specs=[
                # 91 scalars, flat 1-D -> SMEM (no tiny padded VMEM tiles / DMAs)
                pl.BlockSpec(memory_space=pltpu.MemorySpace.SMEM),
                pl.BlockSpec((CONFIG[0], bs, LANE), lambda i: (0, i, 0)),
            ],
            out_specs=pl.BlockSpec((bs, LANE), lambda i: (i, 0)),
        ),
        compiler_params=pltpu.CompilerParams(
            dimension_semantics=("parallel",),   # batch grid shards across TCs
        ),
    )(p_flat, x_t)

    return out.reshape(b_pad)[:B].reshape(B, 1)


def init_params(key, config=CONFIG):
    """Matches the PyTorch module: weights ~ U(-0.5, 0.5) (custom init_weights),
    biases ~ U(-1/sqrt(fan_in), 1/sqrt(fan_in)) (nn.Linear default)."""
    params = {}
    for li in range(len(config) - 1):
        fan_in, fan_out = config[li], config[li + 1]
        key, kw, kb = jax.random.split(key, 3)
        params[f"w{li + 1}"] = jax.random.uniform(
            kw, (fan_in, fan_out), jnp.float32, -0.5, 0.5)
        bound = 1.0 / float(fan_in) ** 0.5
        params[f"b{li + 1}"] = jax.random.uniform(
            kb, (fan_out,), jnp.float32, -bound, bound)
    return params


def nfq_reference(x, params):
    h = x
    for li in range(1, len(CONFIG)):
        h = jax.nn.sigmoid(h @ params[f"w{li}"] + params[f"b{li}"])
    return h


if __name__ == "__main__":
    key = jax.random.PRNGKey(0)
    key, kx1, kx2, kx3 = jax.random.split(key, 4)
    params = init_params(key)

    # Tiny batch: single grid step, single inner sub-slab.
    x_small = jax.random.normal(kx1, (8, 4), jnp.float32)
    out_small = jax.block_until_ready(nfq_forward(x_small, params))
    ref_small = nfq_reference(x_small, params)
    assert out_small.shape == (8, 1), out_small.shape
    assert jnp.allclose(out_small, ref_small, atol=1e-4, rtol=1e-4)

    # Non-multiple-of-128 batch: exercises lane/sublane padding.
    x_mid = jax.random.normal(kx2, (1000, 4), jnp.float32)
    out_mid = jax.block_until_ready(nfq_forward(x_mid, params))
    assert out_mid.shape == (1000, 1), out_mid.shape
    assert jnp.allclose(out_mid, nfq_reference(x_mid, params), atol=1e-4, rtol=1e-4)

    # Default tiling: 2-step "parallel" grid + 2 inner sub-slab iterations.
    x_grid = jax.random.normal(kx3, (5000, 4), jnp.float32)
    out_grid = jax.block_until_ready(nfq_forward(x_grid, params))
    assert out_grid.shape == (5000, 1), out_grid.shape
    assert jnp.allclose(out_grid, nfq_reference(x_grid, params), atol=1e-4, rtol=1e-4)

    # Small tile override: 3-step grid, exercises padding of the row dimension.
    out_grid2 = jax.block_until_ready(nfq_forward(x_grid, params, max_block_rows=16))
    assert out_grid2.shape == (5000, 1), out_grid2.shape
    assert jnp.allclose(out_grid2, nfq_reference(x_grid, params), atol=1e-4, rtol=1e-4)

    print("KERNEL_OK")
</pallas_src>

<mosaic_0001>
module attributes {stable_mosaic.version = 11 : i64} {
  func.func @nfq_kernel(%arg0: i32, %arg1: memref<91xf32, #tpu.memory_space<smem>>, %arg2: memref<4x16x128xf32, #tpu.memory_space<vmem>>, %arg3: memref<16x128xf32, #tpu.memory_space<vmem>>) attributes {dimension_semantics = [#tpu.dimension_semantics<parallel>], iteration_bounds = array<i64: 1>, scalar_prefetch = 0 : i64, scratch_operands = 0 : i64, tpu.core_type = #tpu.core_type<tc>, window_params = [{transform_indices = @transform_0, window_bounds = array<i64: 91>}, {transform_indices = @transform_1, window_bounds = array<i64: 4, 16, 128>}, {transform_indices = @transform_2, window_bounds = array<i64: 16, 128>}]} {
    %c0 = arith.constant 0 : index
    %0 = memref.load %arg1[%c0] : memref<91xf32, #tpu.memory_space<smem>>
    %c1 = arith.constant 1 : index
    %1 = memref.load %arg1[%c1] : memref<91xf32, #tpu.memory_space<smem>>
    %c2 = arith.constant 2 : index
    %2 = memref.load %arg1[%c2] : memref<91xf32, #tpu.memory_space<smem>>
    %c3 = arith.constant 3 : index
    %3 = memref.load %arg1[%c3] : memref<91xf32, #tpu.memory_space<smem>>
    %c4 = arith.constant 4 : index
    %4 = memref.load %arg1[%c4] : memref<91xf32, #tpu.memory_space<smem>>
    %c5 = arith.constant 5 : index
    %5 = memref.load %arg1[%c5] : memref<91xf32, #tpu.memory_space<smem>>
    %c6 = arith.constant 6 : index
    %6 = memref.load %arg1[%c6] : memref<91xf32, #tpu.memory_space<smem>>
    %c7 = arith.constant 7 : index
    %7 = memref.load %arg1[%c7] : memref<91xf32, #tpu.memory_space<smem>>
    %c8 = arith.constant 8 : index
    %8 = memref.load %arg1[%c8] : memref<91xf32, #tpu.memory_space<smem>>
    %c9 = arith.constant 9 : index
    %9 = memref.load %arg1[%c9] : memref<91xf32, #tpu.memory_space<smem>>
    %c10 = arith.constant 10 : index
    %10 = memref.load %arg1[%c10] : memref<91xf32, #tpu.memory_space<smem>>
    %c11 = arith.constant 11 : index
    %11 = memref.load %arg1[%c11] : memref<91xf32, #tpu.memory_space<smem>>
    %c12 = arith.constant 12 : index
    %12 = memref.load %arg1[%c12] : memref<91xf32, #tpu.memory_space<smem>>
    %c13 = arith.constant 13 : index
    %13 = memref.load %arg1[%c13] : memref<91xf32, #tpu.memory_space<smem>>
    %c14 = arith.constant 14 : index
    %14 = memref.load %arg1[%c14] : memref<91xf32, #tpu.memory_space<smem>>
    %c15 = arith.constant 15 : index
    %15 = memref.load %arg1[%c15] : memref<91xf32, #tpu.memory_space<smem>>
    %c16 = arith.constant 16 : index
    %16 = memref.load %arg1[%c16] : memref<91xf32, #tpu.memory_space<smem>>
    %c17 = arith.constant 17 : index
    %17 = memref.load %arg1[%c17] : memref<91xf32, #tpu.memory_space<smem>>
    %c18 = arith.constant 18 : index
    %18 = memref.load %arg1[%c18] : memref<91xf32, #tpu.memory_space<smem>>
    %c19 = arith.constant 19 : index
    %19 = memref.load %arg1[%c19] : memref<91xf32, #tpu.memory_space<smem>>
    %c20 = arith.constant 20 : index
    %20 = memref.load %arg1[%c20] : memref<91xf32, #tpu.memory_space<smem>>
    %c21 = arith.constant 21 : index
    %21 = memref.load %arg1[%c21] : memref<91xf32, #tpu.memory_space<smem>>
    %c22 = arith.constant 22 : index
    %22 = memref.load %arg1[%c22] : memref<91xf32, #tpu.memory_space<smem>>
    %c23 = arith.constant 23 : index
    %23 = memref.load %arg1[%c23] : memref<91xf32, #tpu.memory_space<smem>>
    %c24 = arith.constant 24 : index
    %24 = memref.load %arg1[%c24] : memref<91xf32, #tpu.memory_space<smem>>
    %c25 = arith.constant 25 : index
    %25 = memref.load %arg1[%c25] : memref<91xf32, #tpu.memory_space<smem>>
    %c26 = arith.constant 26 : index
    %26 = memref.load %arg1[%c26] : memref<91xf32, #tpu.memory_space<smem>>
    %c27 = arith.constant 27 : index
    %27 = memref.load %arg1[%c27] : memref<91xf32, #tpu.memory_space<smem>>
    %c28 = arith.constant 28 : index
    %28 = memref.load %arg1[%c28] : memref<91xf32, #tpu.memory_space<smem>>
    %c29 = arith.constant 29 : index
    %29 = memref.load %arg1[%c29] : memref<91xf32, #tpu.memory_space<smem>>
    %c30 = arith.constant 30 : index
    %30 = memref.load %arg1[%c30] : memref<91xf32, #tpu.memory_space<smem>>
    %c31 = arith.constant 31 : index
    %31 = memref.load %arg1[%c31] : memref<91xf32, #tpu.memory_space<smem>>
    %c32 = arith.constant 32 : index
    %32 = memref.load %arg1[%c32] : memref<91xf32, #tpu.memory_space<smem>>
    %c33 = arith.constant 33 : index
    %33 = memref.load %arg1[%c33] : memref<91xf32, #tpu.memory_space<smem>>
    %c34 = arith.constant 34 : index
    %34 = memref.load %arg1[%c34] : memref<91xf32, #tpu.memory_space<smem>>
    %c35 = arith.constant 35 : index
    %35 = memref.load %arg1[%c35] : memref<91xf32, #tpu.memory_space<smem>>
    %c36 = arith.constant 36 : index
    %36 = memref.load %arg1[%c36] : memref<91xf32, #tpu.memory_space<smem>>
    %c37 = arith.constant 37 : index
    %37 = memref.load %arg1[%c37] : memref<91xf32, #tpu.memory_space<smem>>
    %c38 = arith.constant 38 : index
    %38 = memref.load %arg1[%c38] : memref<91xf32, #tpu.memory_space<smem>>
    %c39 = arith.constant 39 : index
    %39 = memref.load %arg1[%c39] : memref<91xf32, #tpu.memory_space<smem>>
    %c40 = arith.constant 40 : index
    %40 = memref.load %arg1[%c40] : memref<91xf32, #tpu.memory_space<smem>>
    %c41 = arith.constant 41 : index
    %41 = memref.load %arg1[%c41] : memref<91xf32, #tpu.memory_space<smem>>
    %c42 = arith.constant 42 : index
    %42 = memref.load %arg1[%c42] : memref<91xf32, #tpu.memory_space<smem>>
    %c43 = arith.constant 43 : index
    %43 = memref.load %arg1[%c43] : memref<91xf32, #tpu.memory_space<smem>>
    %c44 = arith.constant 44 : index
    %44 = memref.load %arg1[%c44] : memref<91xf32, #tpu.memory_space<smem>>
    %c45 = arith.constant 45 : index
    %45 = memref.load %arg1[%c45] : memref<91xf32, #tpu.memory_space<smem>>
    %c46 = arith.constant 46 : index
    %46 = memref.load %arg1[%c46] : memref<91xf32, #tpu.memory_space<smem>>
    %c47 = arith.constant 47 : index
    %47 = memref.load %arg1[%c47] : memref<91xf32, #tpu.memory_space<smem>>
    %c48 = arith.constant 48 : index
    %48 = memref.load %arg1[%c48] : memref<91xf32, #tpu.memory_space<smem>>
    %c49 = arith.constant 49 : index
    %49 = memref.load %arg1[%c49] : memref<91xf32, #tpu.memory_space<smem>>
    %c50 = arith.constant 50 : index
    %50 = memref.load %arg1[%c50] : memref<91xf32, #tpu.memory_space<smem>>
    %c51 = arith.constant 51 : index
    %51 = memref.load %arg1[%c51] : memref<91xf32, #tpu.memory_space<smem>>
    %c52 = arith.constant 52 : index
    %52 = memref.load %arg1[%c52] : memref<91xf32, #tpu.memory_space<smem>>
    %c53 = arith.constant 53 : index
    %53 = memref.load %arg1[%c53] : memref<91xf32, #tpu.memory_space<smem>>
    %c54 = arith.constant 54 : index
    %54 = memref.load %arg1[%c54] : memref<91xf32, #tpu.memory_space<smem>>
    %c55 = arith.constant 55 : index
    %55 = memref.load %arg1[%c55] : memref<91xf32, #tpu.memory_space<smem>>
    %c56 = arith.constant 56 : index
    %56 = memref.load %arg1[%c56] : memref<91xf32, #tpu.memory_space<smem>>
    %c57 = arith.constant 57 : index
    %57 = memref.load %arg1[%c57] : memref<91xf32, #tpu.memory_space<smem>>
    %c58 = arith.constant 58 : index
    %58 = memref.load %arg1[%c58] : memref<91xf32, #tpu.memory_space<smem>>
    %c59 = arith.constant 59 : index
    %59 = memref.load %arg1[%c59] : memref<91xf32, #tpu.memory_space<smem>>
    %c60 = arith.constant 60 : index
    %60 = memref.load %arg1[%c60] : memref<91xf32, #tpu.memory_space<smem>>
    %c61 = arith.constant 61 : index
    %61 = memref.load %arg1[%c61] : memref<91xf32, #tpu.memory_space<smem>>
    %c62 = arith.constant 62 : index
    %62 = memref.load %arg1[%c62] : memref<91xf32, #tpu.memory_space<smem>>
    %c63 = arith.constant 63 : index
    %63 = memref.load %arg1[%c63] : memref<91xf32, #tpu.memory_space<smem>>
    %c64 = arith.constant 64 : index
    %64 = memref.load %arg1[%c64] : memref<91xf32, #tpu.memory_space<smem>>
    %c65 = arith.constant 65 : index
    %65 = memref.load %arg1[%c65] : memref<91xf32, #tpu.memory_space<smem>>
    %c66 = arith.constant 66 : index
    %66 = memref.load %arg1[%c66] : memref<91xf32, #tpu.memory_space<smem>>
    %c67 = arith.constant 67 : index
    %67 = memref.load %arg1[%c67] : memref<91xf32, #tpu.memory_space<smem>>
    %c68 = arith.constant 68 : index
    %68 = memref.load %arg1[%c68] : memref<91xf32, #tpu.memory_space<smem>>
    %c69 = arith.constant 69 : index
    %69 = memref.load %arg1[%c69] : memref<91xf32, #tpu.memory_space<smem>>
    %c70 = arith.constant 70 : index
    %70 = memref.load %arg1[%c70] : memref<91xf32, #tpu.memory_space<smem>>
    %c71 = arith.constant 71 : index
    %71 = memref.load %arg1[%c71] : memref<91xf32, #tpu.memory_space<smem>>
    %c72 = arith.constant 72 : index
    %72 = memref.load %arg1[%c72] : memref<91xf32, #tpu.memory_space<smem>>
    %c73 = arith.constant 73 : index
    %73 = memref.load %arg1[%c73] : memref<91xf32, #tpu.memory_space<smem>>
    %c74 = arith.constant 74 : index
    %74 = memref.load %arg1[%c74] : memref<91xf32, #tpu.memory_space<smem>>
    %c75 = arith.constant 75 : index
    %75 = memref.load %arg1[%c75] : memref<91xf32, #tpu.memory_space<smem>>
    %c76 = arith.constant 76 : index
    %76 = memref.load %arg1[%c76] : memref<91xf32, #tpu.memory_space<smem>>
    %c77 = arith.constant 77 : index
    %77 = memref.load %arg1[%c77] : memref<91xf32, #tpu.memory_space<smem>>
    %c78 = arith.constant 78 : index
    %78 = memref.load %arg1[%c78] : memref<91xf32, #tpu.memory_space<smem>>
    %c79 = arith.constant 79 : index
    %79 = memref.load %arg1[%c79] : memref<91xf32, #tpu.memory_space<smem>>
    %c80 = arith.constant 80 : index
    %80 = memref.load %arg1[%c80] : memref<91xf32, #tpu.memory_space<smem>>
    %c81 = arith.constant 81 : index
    %81 = memref.load %arg1[%c81] : memref<91xf32, #tpu.memory_space<smem>>
    %c82 = arith.constant 82 : index
    %82 = memref.load %arg1[%c82] : memref<91xf32, #tpu.memory_space<smem>>
    %c83 = arith.constant 83 : index
    %83 = memref.load %arg1[%c83] : memref<91xf32, #tpu.memory_space<smem>>
    %c84 = arith.constant 84 : index
    %84 = memref.load %arg1[%c84] : memref<91xf32, #tpu.memory_space<smem>>
    %c85 = arith.constant 85 : index
    %85 = memref.load %arg1[%c85] : memref<91xf32, #tpu.memory_space<smem>>
    %c86 = arith.constant 86 : index
    %86 = memref.load %arg1[%c86] : memref<91xf32, #tpu.memory_space<smem>>
    %c87 = arith.constant 87 : index
    %87 = memref.load %arg1[%c87] : memref<91xf32, #tpu.memory_space<smem>>
    %c88 = arith.constant 88 : index
    %88 = memref.load %arg1[%c88] : memref<91xf32, #tpu.memory_space<smem>>
    %c89 = arith.constant 89 : index
    %89 = memref.load %arg1[%c89] : memref<91xf32, #tpu.memory_space<smem>>
    %c90 = arith.constant 90 : index
    %90 = memref.load %arg1[%c90] : memref<91xf32, #tpu.memory_space<smem>>
    %c0_i32 = arith.constant 0 : i32
    %c1_i32 = arith.constant 1 : i32
    %91 = arith.muli %c0_i32, %c1_i32 : i32
    %c0_i32_0 = arith.constant 0 : i32
    %92 = arith.addi %c0_i32_0, %91 : i32
    %c16_i32 = arith.constant 16 : i32
    %93 = arith.muli %92, %c16_i32 : i32
    %94 = tpu.assume_multiple %93, 16 : i32
    %c0_1 = arith.constant 0 : index
    %95 = arith.index_cast %94 : i32 to index
    %c0_2 = arith.constant 0 : index
    %96 = vector.load %arg2[%c0_1, %95, %c0_2] : memref<4x16x128xf32, #tpu.memory_space<vmem>>, vector<1x16x128xf32>
    %97 = vector.shape_cast %96 : vector<1x16x128xf32> to vector<16x128xf32>
    %c1_3 = arith.constant 1 : index
    %98 = arith.index_cast %94 : i32 to index
    %c0_4 = arith.constant 0 : index
    %99 = vector.load %arg2[%c1_3, %98, %c0_4] : memref<4x16x128xf32, #tpu.memory_space<vmem>>, vector<1x16x128xf32>
    %100 = vector.shape_cast %99 : vector<1x16x128xf32> to vector<16x128xf32>
    %c2_5 = arith.constant 2 : index
    %101 = arith.index_cast %94 : i32 to index
    %c0_6 = arith.constant 0 : index
    %102 = vector.load %arg2[%c2_5, %101, %c0_6] : memref<4x16x128xf32, #tpu.memory_space<vmem>>, vector<1x16x128xf32>
    %103 = vector.shape_cast %102 : vector<1x16x128xf32> to vector<16x128xf32>
    %c3_7 = arith.constant 3 : index
    %104 = arith.index_cast %94 : i32 to index
    %c0_8 = arith.constant 0 : index
    %105 = vector.load %arg2[%c3_7, %104, %c0_8] : memref<4x16x128xf32, #tpu.memory_space<vmem>>, vector<1x16x128xf32>
    %106 = vector.shape_cast %105 : vector<1x16x128xf32> to vector<16x128xf32>
    %107 = vector.broadcast %0 : f32 to vector<16x128xf32>
    %108 = arith.mulf %97, %107 : vector<16x128xf32>
    %109 = vector.broadcast %32 : f32 to vector<16x128xf32>
    %110 = arith.addf %108, %109 : vector<16x128xf32>
    %111 = vector.broadcast %8 : f32 to vector<16x128xf32>
    %112 = arith.mulf %100, %111 : vector<16x128xf32>
    %113 = arith.addf %110, %112 : vector<16x128xf32>
    %114 = vector.broadcast %16 : f32 to vector<16x128xf32>
    %115 = arith.mulf %103, %114 : vector<16x128xf32>
    %116 = arith.addf %113, %115 : vector<16x128xf32>
    %117 = vector.broadcast %24 : f32 to vector<16x128xf32>
    %118 = arith.mulf %106, %117 : vector<16x128xf32>
    %119 = arith.addf %116, %118 : vector<16x128xf32>
    %cst = arith.constant 5.000000e-01 : f32
    %120 = vector.broadcast %cst : f32 to vector<16x128xf32>
    %121 = arith.mulf %120, %119 : vector<16x128xf32>
    %122 = math.tanh %121 : vector<16x128xf32>
    %cst_9 = arith.constant 5.000000e-01 : f32
    %123 = vector.broadcast %cst_9 : f32 to vector<16x128xf32>
    %124 = arith.mulf %123, %122 : vector<16x128xf32>
    %cst_10 = arith.constant 5.000000e-01 : f32
    %125 = vector.broadcast %cst_10 : f32 to vector<16x128xf32>
    %126 = arith.addf %124, %125 : vector<16x128xf32>
    %127 = vector.broadcast %1 : f32 to vector<16x128xf32>
    %128 = arith.mulf %97, %127 : vector<16x128xf32>
    %129 = vector.broadcast %33 : f32 to vector<16x128xf32>
    %130 = arith.addf %128, %129 : vector<16x128xf32>
    %131 = vector.broadcast %9 : f32 to vector<16x128xf32>
    %132 = arith.mulf %100, %131 : vector<16x128xf32>
    %133 = arith.addf %130, %132 : vector<16x128xf32>
    %134 = vector.broadcast %17 : f32 to vector<16x128xf32>
    %135 = arith.mulf %103, %134 : vector<16x128xf32>
    %136 = arith.addf %133, %135 : vector<16x128xf32>
    %137 = vector.broadcast %25 : f32 to vector<16x128xf32>
    %138 = arith.mulf %106, %137 : vector<16x128xf32>
    %139 = arith.addf %136, %138 : vector<16x128xf32>
    %cst_11 = arith.constant 5.000000e-01 : f32
    %140 = vector.broadcast %cst_11 : f32 to vector<16x128xf32>
    %141 = arith.mulf %140, %139 : vector<16x128xf32>
    %142 = math.tanh %141 : vector<16x128xf32>
    %cst_12 = arith.constant 5.000000e-01 : f32
    %143 = vector.broadcast %cst_12 : f32 to vector<16x128xf32>
    %144 = arith.mulf %143, %142 : vector<16x128xf32>
    %cst_13 = arith.constant 5.000000e-01 : f32
    %145 = vector.broadcast %cst_13 : f32 to vector<16x128xf32>
    %146 = arith.addf %144, %145 : vector<16x128xf32>
    %147 = vector.broadcast %2 : f32 to vector<16x128xf32>
    %148 = arith.mulf %97, %147 : vector<16x128xf32>
    %149 = vector.broadcast %34 : f32 to vector<16x128xf32>
    %150 = arith.addf %148, %149 : vector<16x128xf32>
    %151 = vector.broadcast %10 : f32 to vector<16x128xf32>
    %152 = arith.mulf %100, %151 : vector<16x128xf32>
    %153 = arith.addf %150, %152 : vector<16x128xf32>
    %154 = vector.broadcast %18 : f32 to vector<16x128xf32>
    %155 = arith.mulf %103, %154 : vector<16x128xf32>
    %156 = arith.addf %153, %155 : vector<16x128xf32>
    %157 = vector.broadcast %26 : f32 to vector<16x128xf32>
    %158 = arith.mulf %106, %157 : vector<16x128xf32>
    %159 = arith.addf %156, %158 : vector<16x128xf32>
    %cst_14 = arith.constant 5.000000e-01 : f32
    %160 = vector.broadcast %cst_14 : f32 to vector<16x128xf32>
    %161 = arith.mulf %160, %159 : vector<16x128xf32>
    %162 = math.tanh %161 : vector<16x128xf32>
    %cst_15 = arith.constant 5.000000e-01 : f32
    %163 = vector.broadcast %cst_15 : f32 to vector<16x128xf32>
    %164 = arith.mulf %163, %162 : vector<16x128xf32>
    %cst_16 = arith.constant 5.000000e-01 : f32
    %165 = vector.broadcast %cst_16 : f32 to vector<16x128xf32>
    %166 = arith.addf %164, %165 : vector<16x128xf32>
    %167 = vector.broadcast %3 : f32 to vector<16x128xf32>
    %168 = arith.mulf %97, %167 : vector<16x128xf32>
    %169 = vector.broadcast %35 : f32 to vector<16x128xf32>
    %170 = arith.addf %168, %169 : vector<16x128xf32>
    %171 = vector.broadcast %11 : f32 to vector<16x128xf32>
    %172 = arith.mulf %100, %171 : vector<16x128xf32>
    %173 = arith.addf %170, %172 : vector<16x128xf32>
    %174 = vector.broadcast %19 : f32 to vector<16x128xf32>
    %175 = arith.mulf %103, %174 : vector<16x128xf32>
    %176 = arith.addf %173, %175 : vector<16x128xf32>
    %177 = vector.broadcast %27 : f32 to vector<16x128xf32>
    %178 = arith.mulf %106, %177 : vector<16x128xf32>
    %179 = arith.addf %176, %178 : vector<16x128xf32>
    %cst_17 = arith.constant 5.000000e-01 : f32
    %180 = vector.broadcast %cst_17 : f32 to vector<16x128xf32>
    %181 = arith.mulf %180, %179 : vector<16x128xf32>
    %182 = math.tanh %181 : vector<16x128xf32>
    %cst_18 = arith.constant 5.000000e-01 : f32
    %183 = vector.broadcast %cst_18 : f32 to vector<16x128xf32>
    %184 = arith.mulf %183, %182 : vector<16x128xf32>
    %cst_19 = arith.constant 5.000000e-01 : f32
    %185 = vector.broadcast %cst_19 : f32 to vector<16x128xf32>
    %186 = arith.addf %184, %185 : vector<16x128xf32>
    %187 = vector.broadcast %4 : f32 to vector<16x128xf32>
    %188 = arith.mulf %97, %187 : vector<16x128xf32>
    %189 = vector.broadcast %36 : f32 to vector<16x128xf32>
    %190 = arith.addf %188, %189 : vector<16x128xf32>
    %191 = vector.broadcast %12 : f32 to vector<16x128xf32>
    %192 = arith.mulf %100, %191 : vector<16x128xf32>
    %193 = arith.addf %190, %192 : vector<16x128xf32>
    %194 = vector.broadcast %20 : f32 to vector<16x128xf32>
    %195 = arith.mulf %103, %194 : vector<16x128xf32>
    %196 = arith.addf %193, %195 : vector<16x128xf32>
    %197 = vector.broadcast %28 : f32 to vector<16x128xf32>
    %198 = arith.mulf %106, %197 : vector<16x128xf32>
    %199 = arith.addf %196, %198 : vector<16x128xf32>
    %cst_20 = arith.constant 5.000000e-01 : f32
    %200 = vector.broadcast %cst_20 : f32 to vector<16x128xf32>
    %201 = arith.mulf %200, %199 : vector<16x128xf32>
    %202 = math.tanh %201 : vector<16x128xf32>
    %cst_21 = arith.constant 5.000000e-01 : f32
    %203 = vector.broadcast %cst_21 : f32 to vector<16x128xf32>
    %204 = arith.mulf %203, %202 : vector<16x128xf32>
    %cst_22 = arith.constant 5.000000e-01 : f32
    %205 = vector.broadcast %cst_22 : f32 to vector<16x128xf32>
    %206 = arith.addf %204, %205 : vector<16x128xf32>
    %207 = vector.broadcast %5 : f32 to vector<16x128xf32>
    %208 = arith.mulf %97, %207 : vector<16x128xf32>
    %209 = vector.broadcast %37 : f32 to vector<16x128xf32>
    %210 = arith.addf %208, %209 : vector<16x128xf32>
    %211 = vector.broadcast %13 : f32 to vector<16x128xf32>
    %212 = arith.mulf %100, %211 : vector<16x128xf32>
    %213 = arith.addf %210, %212 : vector<16x128xf32>
    %214 = vector.broadcast %21 : f32 to vector<16x128xf32>
    %215 = arith.mulf %103, %214 : vector<16x128xf32>
    %216 = arith.addf %213, %215 : vector<16x128xf32>
    %217 = vector.broadcast %29 : f32 to vector<16x128xf32>
    %218 = arith.mulf %106, %217 : vector<16x128xf32>
    %219 = arith.addf %216, %218 : vector<16x128xf32>
    %cst_23 = arith.constant 5.000000e-01 : f32
    %220 = vector.broadcast %cst_23 : f32 to vector<16x128xf32>
    %221 = arith.mulf %220, %219 : vector<16x128xf32>
    %222 = math.tanh %221 : vector<16x128xf32>
    %cst_24 = arith.constant 5.000000e-01 : f32
    %223 = vector.broadcast %cst_24 : f32 to vector<16x128xf32>
    %224 = arith.mulf %223, %222 : vector<16x128xf32>
    %cst_25 = arith.constant 5.000000e-01 : f32
    %225 = vector.broadcast %cst_25 : f32 to vector<16x128xf32>
    %226 = arith.addf %224, %225 : vector<16x128xf32>
    %227 = vector.broadcast %6 : f32 to vector<16x128xf32>
    %228 = arith.mulf %97, %227 : vector<16x128xf32>
    %229 = vector.broadcast %38 : f32 to vector<16x128xf32>
    %230 = arith.addf %228, %229 : vector<16x128xf32>
    %231 = vector.broadcast %14 : f32 to vector<16x128xf32>
    %232 = arith.mulf %100, %231 : vector<16x128xf32>
    %233 = arith.addf %230, %232 : vector<16x128xf32>
    %234 = vector.broadcast %22 : f32 to vector<16x128xf32>
    %235 = arith.mulf %103, %234 : vector<16x128xf32>
    %236 = arith.addf %233, %235 : vector<16x128xf32>
    %237 = vector.broadcast %30 : f32 to vector<16x128xf32>
    %238 = arith.mulf %106, %237 : vector<16x128xf32>
    %239 = arith.addf %236, %238 : vector<16x128xf32>
    %cst_26 = arith.constant 5.000000e-01 : f32
    %240 = vector.broadcast %cst_26 : f32 to vector<16x128xf32>
    %241 = arith.mulf %240, %239 : vector<16x128xf32>
    %242 = math.tanh %241 : vector<16x128xf32>
    %cst_27 = arith.constant 5.000000e-01 : f32
    %243 = vector.broadcast %cst_27 : f32 to vector<16x128xf32>
    %244 = arith.mulf %243, %242 : vector<16x128xf32>
    %cst_28 = arith.constant 5.000000e-01 : f32
    %245 = vector.broadcast %cst_28 : f32 to vector<16x128xf32>
    %246 = arith.addf %244, %245 : vector<16x128xf32>
    %247 = vector.broadcast %7 : f32 to vector<16x128xf32>
    %248 = arith.mulf %97, %247 : vector<16x128xf32>
    %249 = vector.broadcast %39 : f32 to vector<16x128xf32>
    %250 = arith.addf %248, %249 : vector<16x128xf32>
    %251 = vector.broadcast %15 : f32 to vector<16x128xf32>
    %252 = arith.mulf %100, %251 : vector<16x128xf32>
    %253 = arith.addf %250, %252 : vector<16x128xf32>
    %254 = vector.broadcast %23 : f32 to vector<16x128xf32>
    %255 = arith.mulf %103, %254 : vector<16x128xf32>
    %256 = arith.addf %253, %255 : vector<16x128xf32>
    %257 = vector.broadcast %31 : f32 to vector<16x128xf32>
    %258 = arith.mulf %106, %257 : vector<16x128xf32>
    %259 = arith.addf %256, %258 : vector<16x128xf32>
    %cst_29 = arith.constant 5.000000e-01 : f32
    %260 = vector.broadcast %cst_29 : f32 to vector<16x128xf32>
    %261 = arith.mulf %260, %259 : vector<16x128xf32>
    %262 = math.tanh %261 : vector<16x128xf32>
    %cst_30 = arith.constant 5.000000e-01 : f32
    %263 = vector.broadcast %cst_30 : f32 to vector<16x128xf32>
    %264 = arith.mulf %263, %262 : vector<16x128xf32>
    %cst_31 = arith.constant 5.000000e-01 : f32
    %265 = vector.broadcast %cst_31 : f32 to vector<16x128xf32>
    %266 = arith.addf %264, %265 : vector<16x128xf32>
    %267 = vector.broadcast %40 : f32 to vector<16x128xf32>
    %268 = arith.mulf %126, %267 : vector<16x128xf32>
    %269 = vector.broadcast %80 : f32 to vector<16x128xf32>
    %270 = arith.addf %268, %269 : vector<16x128xf32>
    %271 = vector.broadcast %45 : f32 to vector<16x128xf32>
    %272 = arith.mulf %146, %271 : vector<16x128xf32>
    %273 = arith.addf %270, %272 : vector<16x128xf32>
    %274 = vector.broadcast %50 : f32 to vector<16x128xf32>
    %275 = arith.mulf %166, %274 : vector<16x128xf32>
    %276 = arith.addf %273, %275 : vector<16x128xf32>
    %277 = vector.broadcast %55 : f32 to vector<16x128xf32>
    %278 = arith.mulf %186, %277 : vector<16x128xf32>
    %279 = arith.addf %276, %278 : vector<16x128xf32>
    %280 = vector.broadcast %60 : f32 to vector<16x128xf32>
    %281 = arith.mulf %206, %280 : vector<16x128xf32>
    %282 = arith.addf %279, %281 : vector<16x128xf32>
    %283 = vector.broadcast %65 : f32 to vector<16x128xf32>
    %284 = arith.mulf %226, %283 : vector<16x128xf32>
    %285 = arith.addf %282, %284 : vector<16x128xf32>
    %286 = vector.broadcast %70 : f32 to vector<16x128xf32>
    %287 = arith.mulf %246, %286 : vector<16x128xf32>
    %288 = arith.addf %285, %287 : vector<16x128xf32>
    %289 = vector.broadcast %75 : f32 to vector<16x128xf32>
    %290 = arith.mulf %266, %289 : vector<16x128xf32>
    %291 = arith.addf %288, %290 : vector<16x128xf32>
    %cst_32 = arith.constant 5.000000e-01 : f32
    %292 = vector.broadcast %cst_32 : f32 to vector<16x128xf32>
    %293 = arith.mulf %292, %291 : vector<16x128xf32>
    %294 = math.tanh %293 : vector<16x128xf32>
    %cst_33 = arith.constant 5.000000e-01 : f32
    %295 = vector.broadcast %cst_33 : f32 to vector<16x128xf32>
    %296 = arith.mulf %295, %294 : vector<16x128xf32>
    %cst_34 = arith.constant 5.000000e-01 : f32
    %297 = vector.broadcast %cst_34 : f32 to vector<16x128xf32>
    %298 = arith.addf %296, %297 : vector<16x128xf32>
    %299 = vector.broadcast %41 : f32 to vector<16x128xf32>
    %300 = arith.mulf %126, %299 : vector<16x128xf32>
    %301 = vector.broadcast %81 : f32 to vector<16x128xf32>
    %302 = arith.addf %300, %301 : vector<16x128xf32>
    %303 = vector.broadcast %46 : f32 to vector<16x128xf32>
    %304 = arith.mulf %146, %303 : vector<16x128xf32>
    %305 = arith.addf %302, %304 : vector<16x128xf32>
    %306 = vector.broadcast %51 : f32 to vector<16x128xf32>
    %307 = arith.mulf %166, %306 : vector<16x128xf32>
    %308 = arith.addf %305, %307 : vector<16x128xf32>
    %309 = vector.broadcast %56 : f32 to vector<16x128xf32>
    %310 = arith.mulf %186, %309 : vector<16x128xf32>
    %311 = arith.addf %308, %310 : vector<16x128xf32>
    %312 = vector.broadcast %61 : f32 to vector<16x128xf32>
    %313 = arith.mulf %206, %312 : vector<16x128xf32>
    %314 = arith.addf %311, %313 : vector<16x128xf32>
    %315 = vector.broadcast %66 : f32 to vector<16x128xf32>
    %316 = arith.mulf %226, %315 : vector<16x128xf32>
    %317 = arith.addf %314, %316 : vector<16x128xf32>
    %318 = vector.broadcast %71 : f32 to vector<16x128xf32>
    %319 = arith.mulf %246, %318 : vector<16x128xf32>
    %320 = arith.addf %317, %319 : vector<16x128xf32>
    %321 = vector.broadcast %76 : f32 to vector<16x128xf32>
    %322 = arith.mulf %266, %321 : vector<16x128xf32>
    %323 = arith.addf %320, %322 : vector<16x128xf32>
    %cst_35 = arith.constant 5.000000e-01 : f32
    %324 = vector.broadcast %cst_35 : f32 to vector<16x128xf32>
    %325 = arith.mulf %324, %323 : vector<16x128xf32>
    %326 = math.tanh %325 : vector<16x128xf32>
    %cst_36 = arith.constant 5.000000e-01 : f32
    %327 = vector.broadcast %cst_36 : f32 to vector<16x128xf32>
    %328 = arith.mulf %327, %326 : vector<16x128xf32>
    %cst_37 = arith.constant 5.000000e-01 : f32
    %329 = vector.broadcast %cst_37 : f32 to vector<16x128xf32>
    %330 = arith.addf %328, %329 : vector<16x128xf32>
    %331 = vector.broadcast %42 : f32 to vector<16x128xf32>
    %332 = arith.mulf %126, %331 : vector<16x128xf32>
    %333 = vector.broadcast %82 : f32 to vector<16x128xf32>
    %334 = arith.addf %332, %333 : vector<16x128xf32>
    %335 = vector.broadcast %47 : f32 to vector<16x128xf32>
    %336 = arith.mulf %146, %335 : vector<16x128xf32>
    %337 = arith.addf %334, %336 : vector<16x128xf32>
    %338 = vector.broadcast %52 : f32 to vector<16x128xf32>
    %339 = arith.mulf %166, %338 : vector<16x128xf32>
    %340 = arith.addf %337, %339 : vector<16x128xf32>
    %341 = vector.broadcast %57 : f32 to vector<16x128xf32>
    %342 = arith.mulf %186, %341 : vector<16x128xf32>
    %343 = arith.addf %340, %342 : vector<16x128xf32>
    %344 = vector.broadcast %62 : f32 to vector<16x128xf32>
    %345 = arith.mulf %206, %344 : vector<16x128xf32>
    %346 = arith.addf %343, %345 : vector<16x128xf32>
    %347 = vector.broadcast %67 : f32 to vector<16x128xf32>
    %348 = arith.mulf %226, %347 : vector<16x128xf32>
    %349 = arith.addf %346, %348 : vector<16x128xf32>
    %350 = vector.broadcast %72 : f32 to vector<16x128xf32>
    %351 = arith.mulf %246, %350 : vector<16x128xf32>
    %352 = arith.addf %349, %351 : vector<16x128xf32>
    %353 = vector.broadcast %77 : f32 to vector<16x128xf32>
    %354 = arith.mulf %266, %353 : vector<16x128xf32>
    %355 = arith.addf %352, %354 : vector<16x128xf32>
    %cst_38 = arith.constant 5.000000e-01 : f32
    %356 = vector.broadcast %cst_38 : f32 to vector<16x128xf32>
    %357 = arith.mulf %356, %355 : vector<16x128xf32>
    %358 = math.tanh %357 : vector<16x128xf32>
    %cst_39 = arith.constant 5.000000e-01 : f32
    %359 = vector.broadcast %cst_39 : f32 to vector<16x128xf32>
    %360 = arith.mulf %359, %358 : vector<16x128xf32>
    %cst_40 = arith.constant 5.000000e-01 : f32
    %361 = vector.broadcast %cst_40 : f32 to vector<16x128xf32>
    %362 = arith.addf %360, %361 : vector<16x128xf32>
    %363 = vector.broadcast %43 : f32 to vector<16x128xf32>
    %364 = arith.mulf %126, %363 : vector<16x128xf32>
    %365 = vector.broadcast %83 : f32 to vector<16x128xf32>
    %366 = arith.addf %364, %365 : vector<16x128xf32>
    %367 = vector.broadcast %48 : f32 to vector<16x128xf32>
    %368 = arith.mulf %146, %367 : vector<16x128xf32>
    %369 = arith.addf %366, %368 : vector<16x128xf32>
    %370 = vector.broadcast %53 : f32 to vector<16x128xf32>
    %371 = arith.mulf %166, %370 : vector<16x128xf32>
    %372 = arith.addf %369, %371 : vector<16x128xf32>
    %373 = vector.broadcast %58 : f32 to vector<16x128xf32>
    %374 = arith.mulf %186, %373 : vector<16x128xf32>
    %375 = arith.addf %372, %374 : vector<16x128xf32>
    %376 = vector.broadcast %63 : f32 to vector<16x128xf32>
    %377 = arith.mulf %206, %376 : vector<16x128xf32>
    %378 = arith.addf %375, %377 : vector<16x128xf32>
    %379 = vector.broadcast %68 : f32 to vector<16x128xf32>
    %380 = arith.mulf %226, %379 : vector<16x128xf32>
    %381 = arith.addf %378, %380 : vector<16x128xf32>
    %382 = vector.broadcast %73 : f32 to vector<16x128xf32>
    %383 = arith.mulf %246, %382 : vector<16x128xf32>
    %384 = arith.addf %381, %383 : vector<16x128xf32>
    %385 = vector.broadcast %78 : f32 to vector<16x128xf32>
    %386 = arith.mulf %266, %385 : vector<16x128xf32>
    %387 = arith.addf %384, %386 : vector<16x128xf32>
    %cst_41 = arith.constant 5.000000e-01 : f32
    %388 = vector.broadcast %cst_41 : f32 to vector<16x128xf32>
    %389 = arith.mulf %388, %387 : vector<16x128xf32>
    %390 = math.tanh %389 : vector<16x128xf32>
    %cst_42 = arith.constant 5.000000e-01 : f32
    %391 = vector.broadcast %cst_42 : f32 to vector<16x128xf32>
    %392 = arith.mulf %391, %390 : vector<16x128xf32>
    %cst_43 = arith.constant 5.000000e-01 : f32
    %393 = vector.broadcast %cst_43 : f32 to vector<16x128xf32>
    %394 = arith.addf %392, %393 : vector<16x128xf32>
    %395 = vector.broadcast %44 : f32 to vector<16x128xf32>
    %396 = arith.mulf %126, %395 : vector<16x128xf32>
    %397 = vector.broadcast %84 : f32 to vector<16x128xf32>
    %398 = arith.addf %396, %397 : vector<16x128xf32>
    %399 = vector.broadcast %49 : f32 to vector<16x128xf32>
    %400 = arith.mulf %146, %399 : vector<16x128xf32>
    %401 = arith.addf %398, %400 : vector<16x128xf32>
    %402 = vector.broadcast %54 : f32 to vector<16x128xf32>
    %403 = arith.mulf %166, %402 : vector<16x128xf32>
    %404 = arith.addf %401, %403 : vector<16x128xf32>
    %405 = vector.broadcast %59 : f32 to vector<16x128xf32>
    %406 = arith.mulf %186, %405 : vector<16x128xf32>
    %407 = arith.addf %404, %406 : vector<16x128xf32>
    %408 = vector.broadcast %64 : f32 to vector<16x128xf32>
    %409 = arith.mulf %206, %408 : vector<16x128xf32>
    %410 = arith.addf %407, %409 : vector<16x128xf32>
    %411 = vector.broadcast %69 : f32 to vector<16x128xf32>
    %412 = arith.mulf %226, %411 : vector<16x128xf32>
    %413 = arith.addf %410, %412 : vector<16x128xf32>
    %414 = vector.broadcast %74 : f32 to vector<16x128xf32>
    %415 = arith.mulf %246, %414 : vector<16x128xf32>
    %416 = arith.addf %413, %415 : vector<16x128xf32>
    %417 = vector.broadcast %79 : f32 to vector<16x128xf32>
    %418 = arith.mulf %266, %417 : vector<16x128xf32>
    %419 = arith.addf %416, %418 : vector<16x128xf32>
    %cst_44 = arith.constant 5.000000e-01 : f32
    %420 = vector.broadcast %cst_44 : f32 to vector<16x128xf32>
    %421 = arith.mulf %420, %419 : vector<16x128xf32>
    %422 = math.tanh %421 : vector<16x128xf32>
    %cst_45 = arith.constant 5.000000e-01 : f32
    %423 = vector.broadcast %cst_45 : f32 to vector<16x128xf32>
    %424 = arith.mulf %423, %422 : vector<16x128xf32>
    %cst_46 = arith.constant 5.000000e-01 : f32
    %425 = vector.broadcast %cst_46 : f32 to vector<16x128xf32>
    %426 = arith.addf %424, %425 : vector<16x128xf32>
    %427 = vector.broadcast %85 : f32 to vector<16x128xf32>
    %428 = arith.mulf %298, %427 : vector<16x128xf32>
    %429 = vector.broadcast %90 : f32 to vector<16x128xf32>
    %430 = arith.addf %428, %429 : vector<16x128xf32>
    %431 = vector.broadcast %86 : f32 to vector<16x128xf32>
    %432 = arith.mulf %330, %431 : vector<16x128xf32>
    %433 = arith.addf %430, %432 : vector<16x128xf32>
    %434 = vector.broadcast %87 : f32 to vector<16x128xf32>
    %435 = arith.mulf %362, %434 : vector<16x128xf32>
    %436 = arith.addf %433, %435 : vector<16x128xf32>
    %437 = vector.broadcast %88 : f32 to vector<16x128xf32>
    %438 = arith.mulf %394, %437 : vector<16x128xf32>
    %439 = arith.addf %436, %438 : vector<16x128xf32>
    %440 = vector.broadcast %89 : f32 to vector<16x128xf32>
    %441 = arith.mulf %426, %440 : vector<16x128xf32>
    %442 = arith.addf %439, %441 : vector<16x128xf32>
    %cst_47 = arith.constant 5.000000e-01 : f32
    %443 = vector.broadcast %cst_47 : f32 to vector<16x128xf32>
    %444 = arith.mulf %443, %442 : vector<16x128xf32>
    %445 = math.tanh %444 : vector<16x128xf32>
    %cst_48 = arith.constant 5.000000e-01 : f32
    %446 = vector.broadcast %cst_48 : f32 to vector<16x128xf32>
    %447 = arith.mulf %446, %445 : vector<16x128xf32>
    %cst_49 = arith.constant 5.000000e-01 : f32
    %448 = vector.broadcast %cst_49 : f32 to vector<16x128xf32>
    %449 = arith.addf %447, %448 : vector<16x128xf32>
    %450 = arith.index_cast %94 : i32 to index
    %c0_50 = arith.constant 0 : index
    %451 = vector.load %arg3[%450, %c0_50] : memref<16x128xf32, #tpu.memory_space<vmem>>, vector<16x128xf32>
    tpu.vector_store %arg3[%450, %c0_50], %449 {strides = array<i32>} : memref<16x128xf32, #tpu.memory_space<vmem>>, vector<16x128xf32>,
    %c1_i32_51 = arith.constant 1 : i32
    return
  }
  func.func @transform_0(%arg0: i32) -> i32 {
    %c0_i32 = arith.constant 0 : i32
    %c0_i32_0 = arith.constant 0 : i32
    return %c0_i32 : i32
  }
  func.func @transform_1(%arg0: i32) -> (i32, i32, i32) {
    %c0_i32 = arith.constant 0 : i32
    %c0_i32_0 = arith.constant 0 : i32
    %c0_i32_1 = arith.constant 0 : i32
    return %c0_i32, %arg0, %c0_i32_0 : i32, i32, i32
  }
  func.func @transform_2(%arg0: i32) -> (i32, i32) {
    %c0_i32 = arith.constant 0 : i32
    %c0_i32_0 = arith.constant 0 : i32
    return %arg0, %c0_i32 : i32, i32
  }
}

</mosaic_0001>

<bundles_post_ra>
// kernel: nfq_forward.1
= control target key start
LH: loop header
LB: loop body
LE: loop exit
PB: predicated region body
PF: predicated region fallthrough
CT: control target
= control target key end

     0   :  { %7 = vsyncpa [#allocation3], 0  ;;  %s1395_s0 = inlined_call_operand.vmem [shape: f32[91], index: 0, kind: input, shape index: {}]   ;;  %s1396_s1 = inlined_call_operand.vmem [shape: f32[4,16,128], index: 1, kind: input, shape index: {}]   ;;  %s1397_s2 = inlined_call_operand.vmem [shape: f32[16,128], index: 2, kind: output, shape index: {}]  }
   0x1   :  { %s14_s11 = sshll.u32 %s1395_s0, 4  ;;  %s15_s11 = int_to_ptr.vmem [resolvable:$true] %s14_s11 }
   0x2   :  { %s803_s12 = scalar_lea.vmem %s15_s11, 16  ;;  %p808_p1 = scmp.lt.s32.totalorder %s15_s11, %s15_s11 }
   0x3   :  { %p804_p0 = scmp.ne.s32.totalorder %s15_s11, %s803_s12  ;;  %p809_p2 = scmp.lt.s32.totalorder %s803_s12, %s803_s12 }
   0x5   :  { %p810_p3 = por %p809_p2, %p808_p1 }
   0x7   :  { %p811_p4 = pnand %p810_p3, %p804_p0 }
   0x9   :  { %814 = shalt.err (!%p811_p4)
}
   0xa   :  { %s817_s13 = smov [#allocation2]  }
   0xb   :  { %17 = dma.vmem_to_smem %s15_s11, 16, %s817_s13, [#allocation3]  }
   0xc   :  { %815 = dma.done.wait [#allocation3], 16  }
   0xd   :  { %816 = vsyncadd [#allocation3], 4294967280 }
   0xe   :  { %23 = sfence }
   0xf   :  { %s24_s14 = sld [smem:[#allocation2]]  ;;  %s650_s15 = sld [smem:[#allocation2 + $0x1]]  ;;  %v847_v0 = vld [vmem:[%s1396_s1] sm:$0xff]  ;;  %v852_v1 = vld [vmem:[%s1396_s1 + $0x8] sm:$0xff]  ;;  %v863_v4 = vld [vmem:[%s1396_s1 + $0x10] sm:$0xff] }
  0x10   :  { %s651_s16 = sld [smem:[#allocation2 + $0x2]]  ;;  %s652_s17 = sld [smem:[#allocation2 + $0x3]]  ;;  %1402 = vst [vmem:[#allocation5_spill] sm:$0xff] %v847_v0  ;;  %1403 = vst [vmem:[#allocation6_spill] sm:$0xff] %v852_v1  ;;  %v868_v5 = vld [vmem:[%s1396_s1 + $0x18] sm:$0xff]  ;;  %v919_v22 = vld [vmem:[%s1396_s1 + $0x20] sm:$0xff] }
  0x11   :  { %s836_s18 = sld [smem:[#allocation2 + $0x4]]  ;;  %s838_s0 = sld [smem:[#allocation2 + $0x5]]  ;;  %v940_v27 = vld [vmem:[%s1396_s1 + $0x28] sm:$0xff]  ;;  %v977_v40 = vld [vmem:[%s1396_s1 + $0x30] sm:$0xff]  ;;  %v990_v45 = vld [vmem:[%s1396_s1 + $0x38] sm:$0xff] }
  0x12   :  { %s840_s19 = sld [smem:[#allocation2 + $0x8]]  ;;  %s842_s20 = sld [smem:[#allocation2 + $0x9]] }
  0x13   :  { %s854_s25 = sld [smem:[#allocation2 + $0xa]]  ;;  %s856_s26 = sld [smem:[#allocation2 + $0xb]] }
  0x14   :  { %s858_s27 = sld [smem:[#allocation2 + $0xc]]  ;;  %s882_s4 = sld [smem:[#allocation2 + $0x10]] }
  0x15   :  { %v129_v2 = vstv %s24_s14  ;;  %v158_v3 = vstv %s650_s15  ;;  %s884_s5 = sld [smem:[#allocation2 + $0x11]]  ;;  %s888_s6 = sld [smem:[#allocation2 + $0x12]] }
  0x16   :  { %v871_v6 = vmul.f32 %v129_v2, %v847_v0  ;;  %v874_v7 = vmul.f32 %v129_v2, %v852_v1  ;;  %v877_v8 = vmul.f32 %v158_v3, %v847_v0  ;;  %v880_v9 = vmul.f32 %v158_v3, %v852_v1  ;;  %s890_s7 = sld [smem:[#allocation2 + $0x13]]  ;;  %s904_s8 = sld [smem:[#allocation2 + $0x14]] }
  0x17   :  { %v187_v10 = vstv %s651_s16  ;;  %v216_v11 = vstv %s652_s17  ;;  %v245_v12 = vstv %s836_s18  ;;  %v274_v13 = vstv %s838_s0  ;;  %s914_s9 = sld [smem:[#allocation2 + $0xd]]  ;;  %s933_s12 = sld [smem:[#allocation2 + $0x18]] }
  0x18   :  { %v893_v14 = vmul.f32 %v187_v10, %v847_v0  ;;  %v896_v15 = vmul.f32 %v187_v10, %v852_v1  ;;  %v899_v16 = vmul.f32 %v216_v11, %v847_v0  ;;  %v902_v17 = vmul.f32 %v216_v11, %v852_v1  ;;  %s935_s13 = sld [smem:[#allocation2 + $0x19]]  ;;  %s948_s16 = sld [smem:[#allocation2 + $0x1a]] }
  0x19   :  { %v135_v18 = vstv %s840_s19  ;;  %v164_v19 = vstv %s842_s20  ;;  %v909_v20 = vmul.f32 %v245_v12, %v847_v0  ;;  %v912_v21 = vmul.f32 %v245_v12, %v852_v1  ;;  %s950_s17 = sld [smem:[#allocation2 + $0x1b]]  ;;  %s964_s18 = sld [smem:[#allocation2 + $0x1c]] }
  0x1a   :  { %v922_v23 = vmul.f32 %v863_v4, %v135_v18  ;;  %v925_v24 = vmul.f32 %v868_v5, %v135_v18  ;;  %v928_v25 = vmul.f32 %v863_v4, %v164_v19  ;;  %v931_v26 = vmul.f32 %v868_v5, %v164_v19  ;;  %s983_s20 = sld [smem:[#allocation2 + $0x20]]  ;;  %s985_s21 = sld [smem:[#allocation2 + $0x21]] }
  0x1b   :  { %v193_v28 = vstv %s854_s25  ;;  %v222_v29 = vstv %s856_s26  ;;  %v251_v30 = vstv %s858_s27  ;;  %v946_v31 = vmul.f32 %v274_v13, %v847_v0  ;;  %s998_s24 = sld [smem:[#allocation2 + $0x22]]  ;;  %s1000_s25 = sld [smem:[#allocation2 + $0x23]] }
  0x1c   :  { %v953_v32 = vmul.f32 %v863_v4, %v193_v28  ;;  %v956_v33 = vmul.f32 %v868_v5, %v193_v28  ;;  %v959_v34 = vmul.f32 %v863_v4, %v222_v29  ;;  %v962_v35 = vmul.f32 %v868_v5, %v222_v29  ;;  %s1006_s1 = sld [smem:[#allocation2 + $0x24]]  ;;  %s1008_s26 = sld [smem:[#allocation2 + $0x25]] }
  0x1d   :  { %v140_v36 = vstv %s882_s4  ;;  %v169_v37 = vstv %s884_s5  ;;  %v969_v38 = vmul.f32 %v863_v4, %v251_v30  ;;  %v972_v39 = vmul.f32 %v868_v5, %v251_v30  ;;  %s1058_s27 = sld [smem:[#allocation2 + $0x15]]  ;;  %s1064_s29 = sld [smem:[#allocation2 + $0x6]] }
  0x1e   :  { %v141_v41 = vmul.f32 %v919_v22, %v140_v36  ;;  %v142_v42 = vmul.f32 %v940_v27, %v140_v36  ;;  %v170_v43 = vmul.f32 %v919_v22, %v169_v37  ;;  %v171_v44 = vmul.f32 %v940_v27, %v169_v37  ;;  %s1060_s28 = sld [smem:[#allocation2 + $0x1d]]  ;;  %s1067_s30 = sld [smem:[#allocation2 + $0xe]] }
  0x1f   :  { %v198_v46 = vstv %s888_s6  ;;  %v227_v47 = vstv %s890_s7  ;;  %v256_v48 = vstv %s904_s8  ;;  %v996_v49 = vmul.f32 %v274_v13, %v852_v1  ;;  %s1070_s3 = sld [smem:[#allocation2 + $0x16]]  ;;  %s1100_s6 = sld [smem:[#allocation2 + $0x7]] }
  0x20   :  { %v199_v50 = vmul.f32 %v919_v22, %v198_v46  ;;  %v200_v51 = vmul.f32 %v940_v27, %v198_v46  ;;  %v228_v52 = vmul.f32 %v919_v22, %v227_v47  ;;  %v229_v53 = vmul.f32 %v940_v27, %v227_v47  ;;  %s1072_s4 = sld [smem:[#allocation2 + $0x26]]  ;;  %s1104_s7 = sld [smem:[#allocation2 + $0x27]] }
  0x21   :  { %v145_v54 = vstv %s933_s12  ;;  %v174_v55 = vstv %s935_s13  ;;  %v1013_v56 = vmul.f32 %v919_v22, %v256_v48  ;;  %v1016_v57 = vmul.f32 %v940_v27, %v256_v48  ;;  %s1093_s5 = sld [smem:[#allocation2 + $0x1e]]  ;;  %s1108_s8 = sld [smem:[#allocation2 + $0xf]] }
  0x22   :  { %v146_v58 = vmul.f32 %v977_v40, %v145_v54  ;;  %v147_v59 = vmul.f32 %v990_v45, %v145_v54  ;;  %v175_v60 = vmul.f32 %v977_v40, %v174_v55  ;;  %v176_v61 = vmul.f32 %v990_v45, %v174_v55  ;;  %s1117_s10 = sld [smem:[#allocation2 + $0x1f]]  ;;  %s1119_s11 = sld [smem:[#allocation2 + $0x28]] }
  0x23   :  { %v203_v62 = vstv %s948_s16  ;;  %v232_v63 = vstv %s950_s17  ;;  %v261_v2 = vstv %s964_s18  ;;  %v132_v18 = vstv %s983_s20  ;;  %s1134_s12 = sld [smem:[#allocation2 + $0x2d]]  ;;  %s1136_s13 = sld [smem:[#allocation2 + $0x50]] }
  0x24   :  { %v204_v10 = vmul.f32 %v977_v40, %v203_v62  ;;  %v205_v11 = vmul.f32 %v990_v45, %v203_v62  ;;  %v233_v12 = vmul.f32 %v977_v40, %v232_v63  ;;  %v234_v13 = vmul.f32 %v990_v45, %v232_v63  ;;  %s1145_s14 = sld [smem:[#allocation2 + $0x32]]  ;;  %s1150_s15 = sld [smem:[#allocation2 + $0x37]] }
  0x25   :  { %v161_v19 = vstv %s985_s21  ;;  %v1033_v28 = vmul.f32 %v977_v40, %v261_v2  ;;  %v1036_v29 = vmul.f32 %v990_v45, %v261_v2  ;;  %v133_v30 = vadd.f32 %v132_v18, %v871_v6  ;;  %s1157_s16 = sld [smem:[#allocation2 + $0x3c]]  ;;  %s1159_s17 = sld [smem:[#allocation2 + $0x41]] }
  0x26   :  { %v134_v36 = vadd.f32 %v132_v18, %v874_v7  ;;  %v162_v37 = vadd.f32 %v161_v19, %v877_v8  ;;  %v163_v46 = vadd.f32 %v161_v19, %v880_v9  ;;  %v190_v47 = vstv %s998_s24  ;;  %s1167_s18 = sld [smem:[#allocation2 + $0x29]]  ;;  %s1173_s0 = sld [smem:[#allocation2 + $0x46]] }
  0x27   :  { %v219_v48 = vstv %s1000_s25  ;;  %v248_v54 = vstv %s1006_s1  ;;  %v277_v55 = vstv %s1008_s26  ;;  %v138_v62 = vadd.f32 %v922_v23, %v133_v30  ;;  %s1175_s19 = sld [smem:[#allocation2 + $0x51]]  ;;  %s1182_s20 = sld [smem:[#allocation2 + $0x2e]] }
  0x28   :  { %v139_v63 = vadd.f32 %v925_v24, %v134_v36  ;;  %v167_v3 = vadd.f32 %v928_v25, %v162_v37  ;;  %v168_v2 = vadd.f32 %v931_v26, %v163_v46  ;;  %v191_v6 = vadd.f32 %v190_v47, %v893_v14  ;;  %s1184_s21 = sld [smem:[#allocation2 + $0x33]]  ;;  %s1195_s23 = sld [smem:[#allocation2 + $0x38]] }
  0x29   :  { %v192_v7 = vadd.f32 %v190_v47, %v896_v15  ;;  %v220_v8 = vadd.f32 %v219_v48, %v899_v16  ;;  %v221_v9 = vadd.f32 %v219_v48, %v902_v17  ;;  %v143_v18 = vadd.f32 %v141_v41, %v138_v62  ;;  %s1189_s22 = sld [smem:[#allocation2 + $0x4b]]  ;;  %s1199_s24 = sld [smem:[#allocation2 + $0x3d]] }
  0x2a   :  { %v144_v19 = vadd.f32 %v142_v42, %v139_v63  ;;  %v172_v1 = vadd.f32 %v170_v43, %v167_v3  ;;  %v173_v0 = vadd.f32 %v171_v44, %v168_v2  ;;  %v196_v23 = vadd.f32 %v953_v32, %v191_v6  ;;  %v1406_v2 = vld [vmem:[#allocation5_spill] sm:$0xff]  ;;  %s1201_s25 = sld [smem:[#allocation2 + $0x42]]  ;;  %s1209_s1 = sld [smem:[#allocation2 + $0x47]] }
  0x2b   :  { %v197_v24 = vadd.f32 %v956_v33, %v192_v7  ;;  %v225_v25 = vadd.f32 %v959_v34, %v220_v8  ;;  %v226_v26 = vadd.f32 %v962_v35, %v221_v9  ;;  %v148_v30 = vadd.f32 %v146_v58, %v143_v18  ;;  %v1407_v8 = vld [vmem:[#allocation6_spill] sm:$0xff]  ;;  %s1216_s26 = sld [smem:[#allocation2 + $0x2a]] }
  0x2c   :  { %v149_v14 = vadd.f32 %v147_v59, %v144_v19  ;;  %v177_v36 = vadd.f32 %v175_v60, %v172_v1  ;;  %v178_v15 = vadd.f32 %v176_v61, %v173_v0  ;;  %v201_v16 = vadd.f32 %v199_v50, %v196_v23 }
  0x2d   :  { %v202_v17 = vadd.f32 %v200_v51, %v197_v24  ;;  %v230_v41 = vadd.f32 %v228_v52, %v225_v25  ;;  %v231_v42 = vadd.f32 %v229_v53, %v226_v26  ;;  %v150_v43 = vmul.f32 0.5, %v148_v30 }
  0x2e   :  { %v151_v32 = vmul.f32 0.5, %v149_v14  ;;  %v249_v33 = vadd.f32 %v248_v54, %v909_v20  ;;  %v250_v34 = vadd.f32 %v248_v54, %v912_v21  ;;  %v179_v44 = vmul.f32 0.5, %v177_v36 }
  0x2f   :  { %v180_v35 = vmul.f32 0.5, %v178_v15  ;;  %v206_v58 = vadd.f32 %v204_v10, %v201_v16  ;;  %v207_v59 = vadd.f32 %v205_v11, %v202_v17  ;;  %747 = vtanh.f32 %v150_v43 }
  0x30   :  { %v235_v0 = vadd.f32 %v233_v12, %v230_v41  ;;  %v236_v1 = vadd.f32 %v234_v13, %v231_v42  ;;  %v254_v50 = vadd.f32 %v969_v38, %v249_v33  ;;  %749 = vtanh.f32 %v151_v32 }
  0x31   :  { %v208_v51 = vmul.f32 0.5, %v206_v58  ;;  %v209_v20 = vmul.f32 0.5, %v207_v59  ;;  %v255_v21 = vadd.f32 %v972_v39, %v250_v34  ;;  %751 = vtanh.f32 %v179_v44 }
  0x32   :  { %v237_v52 = vmul.f32 0.5, %v235_v0  ;;  %v238_v53 = vmul.f32 0.5, %v236_v1  ;;  %v259_v38 = vadd.f32 %v1013_v56, %v254_v50  ;;  %753 = vtanh.f32 %v180_v35 }
  0x33   :  { %v260_v60 = vadd.f32 %v1016_v57, %v255_v21  ;;  %v278_v61 = vadd.f32 %v277_v55, %v946_v31  ;;  %v279_v3 = vadd.f32 %v277_v55, %v996_v49  ;;  %755 = vtanh.f32 %v208_v51 }
  0x34   :  { %v264_v39 = vadd.f32 %v1033_v28, %v259_v38  ;;  %v1404_v10 = vstv %s914_s9  ;;  %757 = vtanh.f32 %v209_v20  ;;  %v285_v37 = vstv %s1058_s27  ;;  %s1112_s9 = sld [smem:[#allocation2 + $0x17]]  ;;  %s1227_s27 = sld [smem:[#allocation2 + $0x4c]] }
  0x35   :  { %v281_v11 = vmul.f32 %v863_v4, %v1404_v10  ;;  %v1405_v12 = vmov %v1404_v10  ;;  %v265_v56 = vadd.f32 %v1036_v29, %v260_v60  ;;  %v290_v46 = vstv %s1060_s28  ;;  %s1229_s28 = sld [smem:[#allocation2 + $0x52]] }
  0x36   :  { %v282_v13 = vmul.f32 %v868_v5, %v1405_v12  ;;  %759 = vtanh.f32 %v237_v52  ;;  %v266_v57 = vmul.f32 0.5, %v264_v39  ;;  %v286_v28 = vmul.f32 %v919_v22, %v285_v37 }
  0x37   :  { %v283_v31 = vadd.f32 %v281_v11, %v278_v61  ;;  %761 = vtanh.f32 %v238_v53  ;;  %v267_v49 = vmul.f32 0.5, %v265_v56  ;;  %v287_v48 = vmul.f32 %v940_v27, %v285_v37 }
  0x38   :  { %v284_v47 = vadd.f32 %v282_v13, %v279_v3  ;;  %763 = vtanh.f32 %v266_v57  ;;  %v291_v54 = vmul.f32 %v977_v40, %v290_v46  ;;  %v292_v29 = vmul.f32 %v990_v45, %v290_v46 }
  0x39   :  { %v303_v55 = vstv %s1064_s29  ;;  %765 = vtanh.f32 %v267_v49  ;;  %v288_v62 = vadd.f32 %v286_v28, %v283_v31  ;;  %v748_v7 = vpop.eup %747  ;;  %v306_v18 = vstv %s1072_s4  ;;  %s1233_s29 = sld [smem:[#allocation2 + $0x2f]]  ;;  %s1252_s4 = sld [smem:[#allocation2 + $0x3e]] }
  0x3a   :  { %v289_v63 = vadd.f32 %v287_v48, %v284_v47  ;;  %v304_v6 = vmul.f32 %v303_v55, %v1406_v2  ;;  %v305_v9 = vmul.f32 %v303_v55, %v1407_v8  ;;  %v309_v19 = vstv %s1067_s30  ;;  %v750_v24 = vpop.eup %749  ;;  %s1239_s30 = sld [smem:[#allocation2 + $0x34]] }
  0x3b   :  { %v314_v23 = vstv %s1070_s3  ;;  %v154_v25 = vmul.f32 0.5, %v748_v7  ;;  %v293_v26 = vadd.f32 %v291_v54, %v288_v62  ;;  %v752_v36 = vpop.eup %751  ;;  %v155_v15 = vmul.f32 0.5, %v750_v24  ;;  %s1241_s3 = sld [smem:[#allocation2 + $0x39]] }
  0x3c   :  { %v294_v30 = vadd.f32 %v292_v29, %v289_v63  ;;  %v307_v14 = vadd.f32 %v306_v18, %v304_v6  ;;  %v308_v16 = vadd.f32 %v306_v18, %v305_v9  ;;  %v310_v17 = vmul.f32 %v863_v4, %v309_v19  ;;  %v754_v42 = vpop.eup %753 }
  0x3d   :  { %v311_v41 = vmul.f32 %v868_v5, %v309_v19  ;;  %v1106_v43 = vadd.f32 0.5, %v154_v25  ;;  %v183_v32 = vmul.f32 0.5, %v752_v36  ;;  %v295_v33 = vmul.f32 0.5, %v293_v26  ;;  %v756_v44 = vpop.eup %755 }
  0x3e   :  { %v296_v34 = vmul.f32 0.5, %v294_v30  ;;  %v1110_v35 = vadd.f32 0.5, %v155_v15  ;;  %v184_v58 = vmul.f32 0.5, %v754_v42  ;;  %v312_v59 = vadd.f32 %v310_v17, %v307_v14  ;;  %v758_v1 = vpop.eup %757 }
  0x3f   :  { %v313_v0 = vadd.f32 %v311_v41, %v308_v16  ;;  %v1114_v50 = vadd.f32 0.5, %v183_v32  ;;  %v212_v51 = vmul.f32 0.5, %v756_v44  ;;  %767 = vtanh.f32 %v295_v33 }
  0x40   :  { %v315_v20 = vmul.f32 %v919_v22, %v314_v23  ;;  %v760_v21 = vpop.eup %759  ;;  %v1121_v52 = vadd.f32 0.5, %v184_v58  ;;  %v213_v53 = vmul.f32 0.5, %v758_v1  ;;  %769 = vtanh.f32 %v296_v34 }
  0x41   :  { %v316_v38 = vmul.f32 %v940_v27, %v314_v23  ;;  %v762_v60 = vpop.eup %761  ;;  %v1124_v61 = vadd.f32 0.5, %v212_v51  ;;  %v241_v3 = vmul.f32 0.5, %v760_v21  ;;  %v319_v10 = vstv %s1093_s5  ;;  %s1256_s5 = sld [smem:[#allocation2 + $0x43]] }
  0x42   :  { %v317_v39 = vadd.f32 %v315_v20, %v312_v59  ;;  %v764_v11 = vpop.eup %763  ;;  %v1127_v12 = vadd.f32 0.5, %v213_v53  ;;  %v242_v13 = vmul.f32 0.5, %v762_v60  ;;  %v320_v37 = vmul.f32 %v977_v40, %v319_v10 }
  0x43   :  { %v318_v56 = vadd.f32 %v316_v38, %v313_v0  ;;  %v766_v46 = vpop.eup %765  ;;  %v1130_v57 = vadd.f32 0.5, %v241_v3  ;;  %v270_v31 = vmul.f32 0.5, %v764_v11  ;;  %v321_v47 = vmul.f32 %v990_v45, %v319_v10 }
  0x44   :  { %v332_v49 = vstv %s1100_s6  ;;  %v1138_v28 = vadd.f32 0.5, %v242_v13  ;;  %v271_v48 = vmul.f32 0.5, %v766_v46  ;;  %v322_v54 = vadd.f32 %v320_v37, %v317_v39  ;;  %s1262_s6 = sld [smem:[#allocation2 + $0x48]] }
  0x45   :  { %v333_v29 = vmul.f32 %v332_v49, %v1406_v2  ;;  %v1141_v55 = vadd.f32 0.5, %v270_v31  ;;  %v323_v62 = vadd.f32 %v321_v47, %v318_v56  ;;  %v334_v63 = vmul.f32 %v332_v49, %v1407_v8 }
  0x46   :  { %v335_v6 = vstv %s1104_s7  ;;  %v1147_v7 = vadd.f32 0.5, %v271_v48  ;;  %v324_v9 = vmul.f32 0.5, %v322_v54  ;;  %v338_v19 = vstv %s1108_s8  ;;  %s1264_s7 = sld [smem:[#allocation2 + $0x4d]]  ;;  %s1270_s8 = sld [smem:[#allocation2 + $0x2b]] }
  0x47   :  { %v336_v18 = vadd.f32 %v335_v6, %v333_v29  ;;  %v325_v23 = vmul.f32 0.5, %v323_v62  ;;  %v337_v2 = vadd.f32 %v335_v6, %v334_v63  ;;  %v339_v24 = vmul.f32 %v863_v4, %v338_v19 }
  0x48   :  { %v340_v25 = vmul.f32 %v868_v5, %v338_v19  ;;  %771 = vtanh.f32 %v324_v9  ;;  %v343_v26 = vstv %s1112_s9  ;;  %v348_v30 = vstv %s1117_s10  ;;  %s1276_s9 = sld [smem:[#allocation2 + $0x30]]  ;;  %s1278_s10 = sld [smem:[#allocation2 + $0x53]] }
  0x49   :  { %v361_v8 = vstv %s1119_s11  ;;  %v768_v14 = vpop.eup %767  ;;  %773 = vtanh.f32 %v325_v23  ;;  %v341_v36 = vadd.f32 %v339_v24, %v336_v18  ;;  %v344_v16 = vmul.f32 %v919_v22, %v343_v26  ;;  %s1284_s11 = sld [smem:[#allocation2 + $0x35]] }
  0x4a   :  { %v342_v15 = vadd.f32 %v340_v25, %v337_v2  ;;  %v770_v17 = vpop.eup %769  ;;  %v299_v4 = vmul.f32 0.5, %v768_v14  ;;  %v345_v5 = vmul.f32 %v940_v27, %v343_v26  ;;  %v349_v41 = vmul.f32 %v977_v40, %v348_v30 }
  0x4b   :  { %v350_v42 = vmul.f32 %v990_v45, %v348_v30  ;;  %v300_v32 = vmul.f32 0.5, %v770_v17  ;;  %v346_v33 = vadd.f32 %v344_v16, %v341_v36  ;;  %v362_v34 = vmul.f32 %v361_v8, %v1106_v43 }
  0x4c   :  { %v363_v44 = vmul.f32 %v361_v8, %v1110_v35  ;;  %v1169_v58 = vadd.f32 0.5, %v299_v4  ;;  %v347_v22 = vadd.f32 %v345_v5, %v342_v15  ;;  %v364_v59 = vstv %s1136_s13  ;;  %s1300_s13 = sld [smem:[#allocation2 + $0x3f]] }
  0x4d   :  { %v367_v0 = vstv %s1134_s12  ;;  %v1177_v27 = vadd.f32 0.5, %v300_v32  ;;  %v351_v40 = vadd.f32 %v349_v41, %v346_v33  ;;  %v365_v45 = vadd.f32 %v364_v59, %v362_v34  ;;  %s1293_s12 = sld [smem:[#allocation2 + $0x3a]] }
  0x4e   :  { %v366_v1 = vadd.f32 %v364_v59, %v363_v44  ;;  %v352_v51 = vadd.f32 %v350_v42, %v347_v22  ;;  %v368_v20 = vmul.f32 %v367_v0, %v1114_v50  ;;  %v369_v21 = vmul.f32 %v367_v0, %v1121_v52 }
  0x4f   :  { %v372_v53 = vstv %s1145_s14  ;;  %v353_v38 = vmul.f32 0.5, %v351_v40  ;;  %v377_v39 = vstv %s1150_s15  ;;  %v382_v46 = vstv %s1157_s16  ;;  %s1308_s14 = sld [smem:[#allocation2 + $0x44]]  ;;  %s1313_s15 = sld [smem:[#allocation2 + $0x49]] }
  0x50   :  { %v373_v60 = vmul.f32 %v372_v53, %v1124_v61  ;;  %v374_v3 = vmul.f32 %v372_v53, %v1127_v12  ;;  %v354_v10 = vmul.f32 0.5, %v352_v51  ;;  %v370_v11 = vadd.f32 %v368_v20, %v365_v45  ;;  %s1315_s16 = sld [smem:[#allocation2 + $0x4e]] }
  0x51   :  { %v371_v13 = vadd.f32 %v369_v21, %v366_v1  ;;  %v378_v56 = vmul.f32 %v377_v39, %v1130_v57  ;;  %775 = vtanh.f32 %v353_v38  ;;  %v379_v37 = vmul.f32 %v377_v39, %v1138_v28 }
  0x52   :  { %v387_v31 = vstv %s1159_s17  ;;  %v772_v47 = vpop.eup %771  ;;  %777 = vtanh.f32 %v354_v10  ;;  %v375_v49 = vadd.f32 %v373_v60, %v370_v11  ;;  %v383_v54 = vmul.f32 %v382_v46, %v1141_v55  ;;  %s1319_s17 = sld [smem:[#allocation2 + $0x2c]] }
  0x53   :  { %v376_v48 = vadd.f32 %v374_v3, %v371_v13  ;;  %v774_v29 = vpop.eup %773  ;;  %v328_v62 = vmul.f32 0.5, %v772_v47  ;;  %v384_v63 = vmul.f32 %v382_v46, %v1147_v7  ;;  %v388_v19 = vmul.f32 %v387_v31, %v1169_v58 }
  0x54   :  { %v329_v6 = vmul.f32 0.5, %v774_v29  ;;  %v380_v9 = vadd.f32 %v378_v56, %v375_v49  ;;  %v392_v2 = vstv %s1173_s0  ;;  %v410_v24 = vstv %s1167_s18  ;;  %s1321_s18 = sld [smem:[#allocation2 + $0x54]]  ;;  %s1324_s0 = sld [smem:[#allocation2 + $0x31]] }
  0x55   :  { %v381_v18 = vadd.f32 %v379_v37, %v376_v48  ;;  %v1204_v23 = vadd.f32 0.5, %v328_v62  ;;  %v413_v25 = vstv %s1175_s19  ;;  %v389_v8 = vmul.f32 %v387_v31, %v1177_v27  ;;  %s1328_s19 = sld [smem:[#allocation2 + $0x36]] }
  0x56   :  { %v385_v26 = vadd.f32 %v383_v54, %v380_v9  ;;  %v411_v14 = vmul.f32 %v410_v24, %v1106_v43  ;;  %v412_v36 = vmul.f32 %v410_v24, %v1110_v35  ;;  %v416_v15 = vstv %s1182_s20  ;;  %s1332_s20 = sld [smem:[#allocation2 + $0x3b]] }
  0x57   :  { %v386_v30 = vadd.f32 %v384_v63, %v381_v18  ;;  %v421_v16 = vstv %s1184_s21  ;;  %v1218_v17 = vadd.f32 0.5, %v329_v6  ;;  %v393_v4 = vmul.f32 %v392_v2, %v1204_v23  ;;  %s1334_s21 = sld [smem:[#allocation2 + $0x40]] }
  0x58   :  { %v397_v5 = vstv %s1189_s22  ;;  %v414_v41 = vadd.f32 %v413_v25, %v411_v14  ;;  %v415_v42 = vadd.f32 %v413_v25, %v412_v36  ;;  %v417_v32 = vmul.f32 %v416_v15, %v1114_v50  ;;  %s1345_s22 = sld [smem:[#allocation2 + $0x45]] }
  0x59   :  { %v418_v33 = vmul.f32 %v416_v15, %v1121_v52  ;;  %v422_v34 = vmul.f32 %v421_v16, %v1124_v61  ;;  %v390_v44 = vadd.f32 %v388_v19, %v385_v26  ;;  %v391_v22 = vadd.f32 %v389_v8, %v386_v30 }
  0x5a   :  { %v423_v59 = vmul.f32 %v421_v16, %v1127_v12  ;;  %v426_v0 = vstv %s1195_s23  ;;  %v419_v45 = vadd.f32 %v417_v32, %v414_v41  ;;  %v394_v38 = vmul.f32 %v392_v2, %v1218_v17  ;;  %s1347_s23 = sld [smem:[#allocation2 + $0x4a]] }
  0x5b   :  { %v776_v40 = vpop.eup %775  ;;  %v420_v1 = vadd.f32 %v418_v33, %v415_v42  ;;  %v427_v51 = vmul.f32 %v426_v0, %v1130_v57  ;;  %v428_v20 = vmul.f32 %v426_v0, %v1138_v28  ;;  %v431_v60 = vstv %s1199_s24  ;;  %s1358_s24 = sld [smem:[#allocation2 + $0x4f]] }
  0x5c   :  { %v778_v21 = vpop.eup %777  ;;  %v357_v53 = vmul.f32 0.5, %v776_v40  ;;  %v436_v3 = vstv %s1201_s25  ;;  %v424_v10 = vadd.f32 %v422_v34, %v419_v45  ;;  %v432_v13 = vmul.f32 %v431_v60, %v1141_v55  ;;  %s1366_s25 = sld [smem:[#allocation2 + $0x55]] }
  0x5d   :  { %v358_v39 = vmul.f32 0.5, %v778_v21  ;;  %v425_v11 = vadd.f32 %v423_v59, %v420_v1  ;;  %v433_v37 = vmul.f32 %v431_v60, %v1147_v7  ;;  %v437_v46 = vmul.f32 %v436_v3, %v1169_v58 }
  0x5e   :  { %v1243_v56 = vadd.f32 0.5, %v357_v53  ;;  %v441_v31 = vstv %s1209_s1  ;;  %v429_v49 = vadd.f32 %v427_v51, %v424_v10  ;;  %v438_v54 = vmul.f32 %v436_v3, %v1177_v27  ;;  %s1375_s1 = sld [smem:[#allocation2 + $0x56]] }
  0x5f   :  { %v1248_v47 = vadd.f32 0.5, %v358_v39  ;;  %v430_v48 = vadd.f32 %v428_v20, %v425_v11  ;;  %v395_v29 = vadd.f32 %v393_v4, %v390_v44  ;;  %v396_v62 = vadd.f32 %v394_v38, %v391_v22 }
  0x60   :  { %v459_v63 = vstv %s1216_s26  ;;  %v398_v6 = vmul.f32 %v397_v5, %v1243_v56  ;;  %v434_v18 = vadd.f32 %v432_v13, %v429_v49  ;;  %v442_v2 = vmul.f32 %v441_v31, %v1204_v23  ;;  %s1377_s26 = sld [smem:[#allocation2 + $0x5a]] }
  0x61   :  { %v399_v9 = vmul.f32 %v397_v5, %v1248_v47  ;;  %v435_v19 = vadd.f32 %v433_v37, %v430_v48  ;;  %v443_v24 = vmul.f32 %v441_v31, %v1218_v17  ;;  %v460_v25 = vmul.f32 %v459_v63, %v1106_v43 }
  0x62   :  { %v461_v26 = vmul.f32 %v459_v63, %v1110_v35  ;;  %v439_v30 = vadd.f32 %v437_v46, %v434_v18  ;;  %v446_v14 = vstv %s1227_s27  ;;  %v462_v36 = vstv %s1229_s28  ;;  %s1383_s27 = sld [smem:[#allocation2 + $0x57]]  ;;  %s737_s28 = sld [smem:[#allocation2 + $0x58]] }
  0x63   :  { %v440_v8 = vadd.f32 %v438_v54, %v435_v19  ;;  %v463_v15 = vadd.f32 %v462_v36, %v460_v25  ;;  %v465_v4 = vstv %s1233_s29  ;;  %v400_v5 = vadd.f32 %v398_v6, %v395_v29  ;;  %s738_s29 = sld [smem:[#allocation2 + $0x59]] }
  0x64   :  { %v464_v16 = vadd.f32 %v462_v36, %v461_v26  ;;  %v401_v41 = vadd.f32 %v399_v9, %v396_v62  ;;  %v466_v42 = vmul.f32 %v465_v4, %v1114_v50  ;;  %v447_v32 = vmul.f32 %v446_v14, %v1243_v56 }
  0x65   :  { %v467_v33 = vmul.f32 %v465_v4, %v1121_v52  ;;  %v470_v34 = vstv %s1239_s30  ;;  %v475_v44 = vstv %s1241_s3  ;;  %v444_v22 = vadd.f32 %v442_v2, %v439_v30 }
  0x66   :  { %v445_v59 = vadd.f32 %v443_v24, %v440_v8  ;;  %v448_v0 = vmul.f32 %v446_v14, %v1248_v47  ;;  %v468_v40 = vadd.f32 %v466_v42, %v463_v15  ;;  %v471_v1 = vmul.f32 %v470_v34, %v1124_v61 }
  0x67   :  { %v469_v45 = vadd.f32 %v467_v33, %v464_v16  ;;  %v472_v51 = vmul.f32 %v470_v34, %v1127_v12  ;;  %v476_v20 = vmul.f32 %v475_v44, %v1130_v57  ;;  %v402_v21 = vmul.f32 0.5, %v400_v5 }
  0x68   :  { %v403_v53 = vmul.f32 0.5, %v401_v41  ;;  %v477_v38 = vmul.f32 %v475_v44, %v1138_v28  ;;  %v480_v60 = vstv %s1252_s4  ;;  %v473_v3 = vadd.f32 %v471_v1, %v468_v40 }
  0x69   :  { %v474_v39 = vadd.f32 %v472_v51, %v469_v45  ;;  %v481_v10 = vmul.f32 %v480_v60, %v1141_v55  ;;  %v482_v11 = vmul.f32 %v480_v60, %v1147_v7  ;;  %v449_v13 = vadd.f32 %v447_v32, %v444_v22 }
  0x6a   :  { %v485_v37 = vstv %s1256_s5  ;;  %v490_v46 = vstv %s1262_s6  ;;  %v495_v31 = vstv %s1264_s7  ;;  %v450_v49 = vadd.f32 %v448_v0, %v445_v59 }
  0x6b   :  { %v478_v48 = vadd.f32 %v476_v20, %v473_v3  ;;  %v479_v54 = vadd.f32 %v477_v38, %v474_v39  ;;  %v486_v29 = vmul.f32 %v485_v37, %v1169_v58  ;;  %v487_v62 = vmul.f32 %v485_v37, %v1177_v27 }
  0x6c   :  { %v491_v63 = vmul.f32 %v490_v46, %v1204_v23  ;;  %v492_v6 = vmul.f32 %v490_v46, %v1218_v17  ;;  %v496_v9 = vmul.f32 %v495_v31, %v1243_v56  ;;  %v497_v2 = vmul.f32 %v495_v31, %v1248_v47 }
  0x6d   :  { %v483_v18 = vadd.f32 %v481_v10, %v478_v48  ;;  %v484_v19 = vadd.f32 %v482_v11, %v479_v54  ;;  %v508_v24 = vstv %s1270_s8  ;;  %v511_v30 = vstv %s1278_s10 }
  0x6e   :  { %v509_v25 = vmul.f32 %v508_v24, %v1106_v43  ;;  %v510_v26 = vmul.f32 %v508_v24, %v1110_v35  ;;  %v514_v8 = vstv %s1276_s9  ;;  %779 = vtanh.f32 %v402_v21 }
  0x6f   :  { %v488_v14 = vadd.f32 %v486_v29, %v483_v18  ;;  %v489_v36 = vadd.f32 %v487_v62, %v484_v19  ;;  %v515_v15 = vmul.f32 %v514_v8, %v1114_v50  ;;  %v516_v16 = vmul.f32 %v514_v8, %v1121_v52 }
  0x70   :  { %v512_v4 = vadd.f32 %v511_v30, %v509_v25  ;;  %v513_v5 = vadd.f32 %v511_v30, %v510_v26  ;;  %v519_v41 = vstv %s1284_s11  ;;  %v451_v42 = vmul.f32 0.5, %v449_v13 }
  0x71   :  { %v493_v32 = vadd.f32 %v491_v63, %v488_v14  ;;  %v494_v33 = vadd.f32 %v492_v6, %v489_v36  ;;  %v520_v34 = vmul.f32 %v519_v41, %v1124_v61  ;;  %v452_v44 = vmul.f32 0.5, %v450_v49 }
  0x72   :  { %v517_v22 = vadd.f32 %v515_v15, %v512_v4  ;;  %v518_v59 = vadd.f32 %v516_v16, %v513_v5  ;;  %v521_v0 = vmul.f32 %v519_v41, %v1127_v12  ;;  %781 = vtanh.f32 %v403_v53 }
  0x73   :  { %v498_v40 = vadd.f32 %v496_v9, %v493_v32  ;;  %v499_v45 = vadd.f32 %v497_v2, %v494_v33  ;;  %v524_v1 = vstv %s1293_s12  ;;  %783 = vtanh.f32 %v451_v42 }
  0x74   :  { %v522_v51 = vadd.f32 %v520_v34, %v517_v22  ;;  %v523_v20 = vadd.f32 %v521_v0, %v518_v59  ;;  %v525_v21 = vmul.f32 %v524_v1, %v1130_v57  ;;  %v526_v38 = vmul.f32 %v524_v1, %v1138_v28 }
  0x75   :  { %v500_v60 = vmul.f32 0.5, %v498_v40  ;;  %v501_v3 = vmul.f32 0.5, %v499_v45  ;;  %v529_v39 = vstv %s1300_s13  ;;  %785 = vtanh.f32 %v452_v44 }
  0x76   :  { %v527_v53 = vadd.f32 %v525_v21, %v522_v51  ;;  %v528_v10 = vadd.f32 %v526_v38, %v523_v20  ;;  %v530_v11 = vmul.f32 %v529_v39, %v1141_v55  ;;  %v531_v13 = vmul.f32 %v529_v39, %v1147_v7 }
  0x77   :  { %787 = vtanh.f32 %v500_v60  ;;  %v534_v37 = vstv %s1308_s14  ;;  %v539_v54 = vstv %s1313_s15  ;;  %v544_v29 = vstv %s1315_s16 }
  0x78   :  { %789 = vtanh.f32 %v501_v3  ;;  %v532_v46 = vadd.f32 %v530_v11, %v527_v53  ;;  %v535_v31 = vmul.f32 %v534_v37, %v1169_v58  ;;  %v533_v49 = vadd.f32 %v531_v13, %v528_v10  ;;  %v780_v62 = vpop.eup %779 }
  0x79   :  { %v536_v48 = vmul.f32 %v534_v37, %v1177_v27  ;;  %v540_v6 = vmul.f32 %v539_v54, %v1204_v23  ;;  %v541_v9 = vmul.f32 %v539_v54, %v1218_v17  ;;  %v545_v18 = vmul.f32 %v544_v29, %v1243_v56 }
  0x7a   :  { %v537_v63 = vadd.f32 %v535_v31, %v532_v46  ;;  %v546_v2 = vmul.f32 %v544_v29, %v1248_v47  ;;  %v557_v24 = vstv %s1319_s17  ;;  %v560_v25 = vstv %s1321_s18 }
  0x7b   :  { %v538_v19 = vadd.f32 %v536_v48, %v533_v49  ;;  %v558_v30 = vmul.f32 %v557_v24, %v1106_v43  ;;  %v559_v8 = vmul.f32 %v557_v24, %v1110_v35  ;;  %v563_v14 = vstv %s1324_s0 }
  0x7c   :  { %v542_v26 = vadd.f32 %v540_v6, %v537_v63  ;;  %v782_v36 = vpop.eup %781  ;;  %v564_v16 = vmul.f32 %v563_v14, %v1114_v50  ;;  %v565_v4 = vmul.f32 %v563_v14, %v1121_v52  ;;  %v568_v5 = vstv %s1328_s19 }
  0x7d   :  { %v543_v15 = vadd.f32 %v541_v9, %v538_v19  ;;  %v561_v42 = vadd.f32 %v560_v25, %v558_v30  ;;  %v562_v32 = vadd.f32 %v560_v25, %v559_v8  ;;  %v569_v33 = vmul.f32 %v568_v5, %v1124_v61  ;;  %v784_v43 = vpop.eup %783 }
  0x7e   :  { %v547_v41 = vadd.f32 %v545_v18, %v542_v26  ;;  %v570_v35 = vmul.f32 %v568_v5, %v1127_v12  ;;  %v573_v44 = vstv %s1332_s20  ;;  %v578_v22 = vstv %s1334_s21 }
  0x7f   :  { %v548_v34 = vadd.f32 %v546_v2, %v543_v15  ;;  %v786_v59 = vpop.eup %785  ;;  %v566_v0 = vadd.f32 %v564_v16, %v561_v42  ;;  %v567_v52 = vadd.f32 %v565_v4, %v562_v32  ;;  %v574_v40 = vmul.f32 %v573_v44, %v1130_v57 }
  0x80   :  { %v549_v50 = vmul.f32 0.5, %v547_v41  ;;  %v575_v51 = vmul.f32 %v573_v44, %v1138_v28  ;;  %v579_v12 = vmul.f32 %v578_v22, %v1141_v55  ;;  %v580_v38 = vmul.f32 %v578_v22, %v1147_v7 }
  0x81   :  { %v788_v45 = vpop.eup %787  ;;  %v550_v1 = vmul.f32 0.5, %v548_v34  ;;  %v571_v61 = vadd.f32 %v569_v33, %v566_v0  ;;  %v572_v21 = vadd.f32 %v570_v35, %v567_v52  ;;  %v406_v60 = vmul.f32 0.5, %v780_v62 }
  0x82   :  { %v790_v20 = vpop.eup %789  ;;  %v583_v3 = vstv %s1345_s22  ;;  %v588_v39 = vstv %s1347_s23  ;;  %791 = vtanh.f32 %v549_v50  ;;  %v407_v11 = vmul.f32 0.5, %v782_v36 }
  0x83   :  { %v576_v53 = vadd.f32 %v574_v40, %v571_v61  ;;  %v577_v57 = vadd.f32 %v575_v51, %v572_v21  ;;  %v584_v10 = vmul.f32 %v583_v3, %v1169_v58  ;;  %793 = vtanh.f32 %v550_v1 }
  0x84   :  { %v585_v28 = vmul.f32 %v583_v3, %v1177_v27  ;;  %v589_v13 = vmul.f32 %v588_v39, %v1204_v23  ;;  %v590_v37 = vmul.f32 %v588_v39, %v1218_v17  ;;  %v593_v46 = vstv %s1358_s24 }
  0x85   :  { %v581_v55 = vadd.f32 %v579_v12, %v576_v53  ;;  %v582_v7 = vadd.f32 %v580_v38, %v577_v57  ;;  %v594_v58 = vmul.f32 %v593_v46, %v1243_v56  ;;  %v595_v48 = vmul.f32 %v593_v46, %v1248_v47 }
  0x86   :  { %v408_v54 = vadd.f32 0.5, %v406_v60  ;;  %v409_v27 = vadd.f32 0.5, %v407_v11  ;;  %v455_v29 = vmul.f32 0.5, %v784_v43  ;;  %v456_v23 = vmul.f32 0.5, %v786_v59 }
  0x87   :  { %v586_v31 = vadd.f32 %v584_v10, %v581_v55  ;;  %v587_v49 = vadd.f32 %v585_v28, %v582_v7  ;;  %v606_v6 = vstv %s1366_s25  ;;  %v504_v9 = vmul.f32 0.5, %v788_v45 }
  0x88   :  { %v505_v17 = vmul.f32 0.5, %v790_v20  ;;  %v457_v2 = vadd.f32 0.5, %v455_v29  ;;  %v458_v24 = vadd.f32 0.5, %v456_v23  ;;  %v607_v56 = vmul.f32 %v606_v6, %v408_v54 }
  0x89   :  { %v591_v62 = vadd.f32 %v589_v13, %v586_v31  ;;  %v592_v63 = vadd.f32 %v590_v37, %v587_v49  ;;  %v608_v25 = vmul.f32 %v606_v6, %v409_v27  ;;  %v609_v8 = vstv %s1377_s26 }
  0x8a   :  { %v612_v14 = vstv %s1375_s1  ;;  %v506_v15 = vadd.f32 0.5, %v504_v9  ;;  %v507_v16 = vadd.f32 0.5, %v505_v17  ;;  %v610_v5 = vadd.f32 %v609_v8, %v607_v56 }
  0x8b   :  { %v596_v18 = vadd.f32 %v594_v58, %v591_v62  ;;  %v597_v19 = vadd.f32 %v595_v48, %v592_v63  ;;  %v613_v41 = vmul.f32 %v612_v14, %v457_v2  ;;  %v611_v32 = vadd.f32 %v609_v8, %v608_v25 }
  0x8c   :  { %v792_v47 = vpop.eup %791  ;;  %v614_v33 = vmul.f32 %v612_v14, %v458_v24  ;;  %v617_v43 = vstv %s1383_s27  ;;  %v622_v0 = vstv %s737_s28  ;;  %v627_v12 = vstv %s738_s29 }
  0x8d   :  { %v598_v26 = vmul.f32 0.5, %v596_v18  ;;  %v599_v30 = vmul.f32 0.5, %v597_v19  ;;  %v794_v36 = vpop.eup %793  ;;  %v553_v4 = vmul.f32 0.5, %v792_v47  ;;  %v615_v35 = vadd.f32 %v613_v41, %v610_v5 }
  0x8e   :  { %v554_v42 = vmul.f32 0.5, %v794_v36  ;;  %v618_v44 = vmul.f32 %v617_v43, %v506_v15  ;;  %v616_v59 = vadd.f32 %v614_v33, %v611_v32  ;;  %v619_v50 = vmul.f32 %v617_v43, %v507_v16 }
  0x8f   :  { %795 = vtanh.f32 %v598_v26  ;;  %v555_v34 = vadd.f32 0.5, %v553_v4 }
  0x90   :  { %797 = vtanh.f32 %v599_v30  ;;  %v556_v22 = vadd.f32 0.5, %v554_v42  ;;  %v620_v52 = vadd.f32 %v618_v44, %v615_v35  ;;  %v621_v1 = vadd.f32 %v619_v50, %v616_v59 }
  0x91   :  { %v623_v40 = vmul.f32 %v622_v0, %v555_v34 }
  0x92   :  { %v624_v51 = vmul.f32 %v622_v0, %v556_v22 }
  0x93   :  { %v625_v60 = vadd.f32 %v623_v40, %v620_v52 }
  0x94   :  { %v626_v39 = vadd.f32 %v624_v51, %v621_v1 }
  0x99   :  { %v796_v45 = vpop.eup %795 }
  0x9a   :  { %v798_v20 = vpop.eup %797  ;;  %v602_v61 = vmul.f32 0.5, %v796_v45 }
  0x9b   :  { %v603_v21 = vmul.f32 0.5, %v798_v20 }
  0x9c   :  { %v604_v38 = vadd.f32 0.5, %v602_v61 }
  0x9d   :  { %v605_v3 = vadd.f32 0.5, %v603_v21 }
  0x9e   :  { %v628_v53 = vmul.f32 %v627_v12, %v604_v38 }
  0x9f   :  { %v629_v57 = vmul.f32 %v627_v12, %v605_v3 }
  0xa0   :  { %v630_v10 = vadd.f32 %v628_v53, %v625_v60 }
  0xa1   :  { %v631_v11 = vadd.f32 %v629_v57, %v626_v39 }
  0xa2   :  { %v632_v28 = vmul.f32 0.5, %v630_v10 }
  0xa3   :  { %v633_v13 = vmul.f32 0.5, %v631_v11 }
  0xa4   :  { %799 = vtanh.f32 %v632_v28 }
  0xa5   :  { %801 = vtanh.f32 %v633_v13 }
  0xae   :  { %v800_v55 = vpop.eup %799 }
  0xaf   :  { %v802_v7 = vpop.eup %801  ;;  %v636_v37 = vmul.f32 0.5, %v800_v55 }
  0xb0   :  { %v637_v46 = vmul.f32 0.5, %v802_v7 }
  0xb1   :  { %v638_v31 = vadd.f32 0.5, %v636_v37 }
  0xb2   :  { %v639_v49 = vadd.f32 0.5, %v637_v46 }
  0xb3   :  { %640 = vst [vmem:[%s1397_s2] sm:$0xff] %v638_v31 }
  0xb4   :  { %641 = vst [vmem:[%s1397_s2 + $0x8] sm:$0xff] %v639_v49 }
  0xb5   :  { %646 = vsyncpa [#allocation3], 1 }

</bundles_post_ra>
